<compile_context>
chip_gen: v5e
topology: v5e:2x2
jax: 0.10.0
libtpu: 0.0.40
codegen_flags: <defaults>
</compile_context>

<pallas_src>
import jax
import jax.numpy as jnp
from jax import lax
from jax.experimental import pallas as pl
from jax.experimental.pallas import tpu as pltpu


def _round_up(x, m):
    return ((x + m - 1) // m) * m


def gru_kernel(x_ref, h0_ref, wih_ref, whh_ref, bgi_ref, bhn_ref,
               out_ref, gi_scr, h_scr):
    """One (batch-block, time-chunk) grid step of the GRU.

    x_ref   : (T_CHUNK, B_BLK, H)   bf16 embedded inputs for this chunk
    h0_ref  : (B_BLK, H)            f32 initial hidden (consumed at chunk 0)
    wih_ref : (H, 3H)               bf16 packed input-to-hidden weights (r,z,n)
    whh_ref : (H, 3H)               bf16 packed hidden-to-hidden weights (r,z,n)
    bgi_ref : (1, 3H)               f32 folded biases [b_ir+b_hr, b_iz+b_hz, b_in]
    bhn_ref : (1, H)                f32 b_hn (stays inside r * (gh_n + b_hn))
    out_ref : (T_CHUNK, B_BLK, H)   f32 hidden states for this chunk
    gi_scr  : (T_CHUNK, B_BLK, 3H)  f32 scratch: precomputed input projections
    h_scr   : (B_BLK, H)            f32 scratch: hidden carried across chunks
    """
    T_CHUNK, B_BLK, H = x_ref.shape

    # First time-chunk of this batch block: load the initial hidden state.
    @pl.when(pl.program_id(1) == 0)
    def _():
        h_scr[...] = h0_ref[...]

    # ---- Phase 1: one large bf16 MXU matmul for the whole chunk's input
    # projection (biases for r/z and the n-gate input bias are pre-folded).
    # TODO(synk): software-pipeline chunk i+1's phase-1 matmul against chunk
    # i's recurrence via a manual x prefetch + second gi buffer.
    x2d = x_ref[...].reshape(T_CHUNK * B_BLK, H)
    gi = jnp.dot(x2d, wih_ref[...], preferred_element_type=jnp.float32)
    gi_scr[...] = (gi + bgi_ref[...]).reshape(T_CHUNK, B_BLK, 3 * H)

    # Hoist time-invariant operands out of the recurrence loop.
    w_hh = whh_ref[...]          # (H, 3H) bf16
    b_hn = bhn_ref[...]          # (1, H)  f32

    # ---- Phase 2: serial recurrence, one packed bf16 matmul per step.
    # TODO(synk): on v6e, hold w_hh in MXU staging registers across steps via
    # pltpu.matmul_push_rhs / matmul_acc_lhs / matmul_pop.
    def step(t, h):
        gi_t = gi_scr[t]                                               # (B_BLK, 3H)
        gh = jnp.dot(h.astype(jnp.bfloat16), w_hh,
                     preferred_element_type=jnp.float32)               # (B_BLK, 3H)
        r = jax.nn.sigmoid(gi_t[:, 0 * H:1 * H] + gh[:, 0 * H:1 * H])
        z = jax.nn.sigmoid(gi_t[:, 1 * H:2 * H] + gh[:, 1 * H:2 * H])
        n = jnp.tanh(gi_t[:, 2 * H:3 * H] + r * (gh[:, 2 * H:3 * H] + b_hn))
        h_new = n + z * (h - n)                                        # == (1-z)*n + z*h
        out_ref[t] = h_new.astype(out_ref.dtype)
        return h_new

    h_last = lax.fori_loop(0, T_CHUNK, step, h_scr[...],
                           unroll=min(8, T_CHUNK))
    h_scr[...] = h_last


def session_encoder_rnn_forward(input_ids, hidden, emb_table, w_ih, w_hh,
                                b_ih, b_hh, *, t_chunk=32):
    """
    input_ids: (B, T) int32 token ids
    hidden:    (1, B, H) float32 initial hidden state
    emb_table: (V, H) float32 embedding table
    w_ih, w_hh: (3, H, H) float32  pre-transposed per-gate weights (gate order r, z, n)
    b_ih, b_hh: (3, 1, H) float32  per-gate biases (gate order r, z, n)
    Returns (output (T, B, H), hidden (1, B, H)) — matching torch.nn.GRU semantics.
    """
    # torch.transpose(input, 1, 0) -> time-major ids, then embedding lookup.
    # TODO(synk): fuse the embedding gather into the kernel (scalar-prefetched
    # ids + in-kernel DMA row gather) to avoid materializing `embedded` in HBM.
    ids_tm = jnp.transpose(input_ids, (1, 0))              # (T, B)
    embedded = emb_table[ids_tm]                            # (T, B, H) f32
    T, B, H = embedded.shape

    # ---- Pad to TPU-friendly shapes: lanes (H -> x128), sublanes (B -> x8).
    H_pad = _round_up(H, 128)
    B_pad = _round_up(B, 8)
    if B_pad > 128:
        B_pad = _round_up(B_pad, 128)
        b_blk = 128
    else:
        b_blk = B_pad
    t_chunk = min(t_chunk, T)
    T_pad = _round_up(T, t_chunk)

    x = jnp.pad(embedded, ((0, T_pad - T), (0, B_pad - B), (0, H_pad - H)))
    x = x.astype(jnp.bfloat16)                              # bf16 MXU operand
    h0 = jnp.pad(hidden[0], ((0, B_pad - B), (0, H_pad - H)))   # (B_pad, H_pad) f32

    def pad_w(w):   # (H, H) -> (H_pad, H_pad)
        return jnp.pad(w, ((0, H_pad - H), (0, H_pad - H)))

    def pad_b(b):   # (1, H) -> (1, H_pad)
        return jnp.pad(b, ((0, 0), (0, H_pad - H)))

    # Pack gate weights into single (H_pad, 3*H_pad) bf16 matrices (order r, z, n).
    w_ih_p = jnp.concatenate([pad_w(w_ih[0]), pad_w(w_ih[1]), pad_w(w_ih[2])],
                             axis=1).astype(jnp.bfloat16)
    w_hh_p = jnp.concatenate([pad_w(w_hh[0]), pad_w(w_hh[1]), pad_w(w_hh[2])],
                             axis=1).astype(jnp.bfloat16)
    # Fold biases (kept f32): r/z gates get b_ih + b_hh; n gate keeps only b_ih
    # here — its b_hh stays inside r * (gh_n + b_hn) in the kernel.
    b_gi = jnp.concatenate([pad_b(b_ih[0] + b_hh[0]),
                            pad_b(b_ih[1] + b_hh[1]),
                            pad_b(b_ih[2])], axis=1)         # (1, 3*H_pad) f32
    b_hn = pad_b(b_hh[2])                                    # (1, H_pad)   f32

    grid = (B_pad // b_blk, T_pad // t_chunk)

    out_pad = pl.pallas_call(
        gru_kernel,
        out_shape=jax.ShapeDtypeStruct((T_pad, B_pad, H_pad), jnp.float32),
        grid_spec=pltpu.PrefetchScalarGridSpec(
            num_scalar_prefetch=0,
            grid=grid,
            in_specs=[
                # Per-chunk embedded inputs.
                pl.BlockSpec((t_chunk, b_blk, H_pad), lambda b, t: (t, b, 0)),
                # Initial hidden state for this batch block.
                pl.BlockSpec((b_blk, H_pad), lambda b, t: (b, 0)),
                # Loop-invariant weights/biases: single-buffered.
                pl.BlockSpec((H_pad, 3 * H_pad), lambda b, t: (0, 0),
                             pipeline_mode=pl.Buffered(1)),
                pl.BlockSpec((H_pad, 3 * H_pad), lambda b, t: (0, 0),
                             pipeline_mode=pl.Buffered(1)),
                pl.BlockSpec((1, 3 * H_pad), lambda b, t: (0, 0),
                             pipeline_mode=pl.Buffered(1)),
                pl.BlockSpec((1, H_pad), lambda b, t: (0, 0),
                             pipeline_mode=pl.Buffered(1)),
            ],
            out_specs=pl.BlockSpec((t_chunk, b_blk, H_pad), lambda b, t: (t, b, 0)),
            scratch_shapes=[
                pltpu.VMEM((t_chunk, b_blk, 3 * H_pad), jnp.float32),   # gi per chunk
                pltpu.VMEM((b_blk, H_pad), jnp.float32),                # carried hidden
            ],
        ),
        compiler_params=pltpu.CompilerParams(
            # Batch blocks are independent (megacore-parallel on v7x); the time
            # axis carries the hidden state across chunks -> "arbitrary".
            dimension_semantics=("parallel", "arbitrary"),
            vmem_limit_bytes=64 * 1024 * 1024,
        ),
    )(x, h0, w_ih_p, w_hh_p, b_gi, b_hn)

    out_seq = out_pad[:T, :B, :H]                            # strip padding
    h_final = out_seq[-1][None]                              # final hidden == last output
    return out_seq, h_final


def _reference_gru(input_ids, hidden, emb_table, w_ih, w_hh, b_ih, b_hh):
    """Pure-JAX f32 reference matching torch.nn.GRU (for verification)."""
    ids_tm = jnp.transpose(input_ids, (1, 0))
    embedded = emb_table[ids_tm]                             # (T, B, H)

    def step(h, x):
        gi_r = x @ w_ih[0] + b_ih[0]
        gi_z = x @ w_ih[1] + b_ih[1]
        gi_n = x @ w_ih[2] + b_ih[2]
        gh_r = h @ w_hh[0] + b_hh[0]
        gh_z = h @ w_hh[1] + b_hh[1]
        gh_n = h @ w_hh[2] + b_hh[2]
        r = jax.nn.sigmoid(gi_r + gh_r)
        z = jax.nn.sigmoid(gi_z + gh_z)
        n = jnp.tanh(gi_n + r * gh_n)
        h_new = (1.0 - z) * n + z * h
        return h_new, h_new

    h_last, outs = jax.lax.scan(step, hidden[0], embedded)
    return outs, h_last[None]


if __name__ == "__main__":
    # Small, deterministic problem: vocab=50, hidden=32, batch=2, seq=8.
    V, H, B, T = 50, 32, 2, 8

    key = jax.random.PRNGKey(0)
    k_emb, k_wih, k_whh, k_bih, k_bhh, k_ids, k_h = jax.random.split(key, 7)

    # nn.Embedding default init: N(0, 1)
    emb_table = jax.random.normal(k_emb, (V, H), dtype=jnp.float32)

    # nn.GRU default init: U(-1/sqrt(H), 1/sqrt(H)); stored pre-transposed per gate.
    bound = 1.0 / (H ** 0.5)
    w_ih = jax.random.uniform(k_wih, (3, H, H), minval=-bound, maxval=bound,
                              dtype=jnp.float32)
    w_hh = jax.random.uniform(k_whh, (3, H, H), minval=-bound, maxval=bound,
                              dtype=jnp.float32)
    b_ih = jax.random.uniform(k_bih, (3, 1, H), minval=-bound, maxval=bound,
                              dtype=jnp.float32)
    b_hh = jax.random.uniform(k_bhh, (3, 1, H), minval=-bound, maxval=bound,
                              dtype=jnp.float32)

    # Inputs: (B, T) int token ids, initial hidden (1, B, H).
    input_ids = jax.random.randint(k_ids, (B, T), 0, V, dtype=jnp.int32)
    hidden0 = jax.random.normal(k_h, (1, B, H), dtype=jnp.float32)

    out, h_n = session_encoder_rnn_forward(
        input_ids, hidden0, emb_table, w_ih, w_hh, b_ih, b_hh)
    jax.block_until_ready((out, h_n))

    out_ref, h_ref = _reference_gru(
        input_ids, hidden0, emb_table, w_ih, w_hh, b_ih, b_hh)

    assert out.shape == (T, B, H) and h_n.shape == (1, B, H)
    # Kernel matmul operands are bf16 (f32 accumulation / gate math), so compare
    # against the f32 reference with a bf16-appropriate tolerance.
    assert jnp.allclose(out, out_ref, atol=2e-2, rtol=2e-2)
    assert jnp.allclose(h_n, h_ref, atol=2e-2, rtol=2e-2)

    print("KERNEL_OK")
</pallas_src>

<mosaic_0001>
module attributes {stable_mosaic.version = 11 : i64} {
  func.func @gru_kernel(%arg0: i32, %arg1: i32, %arg2: memref<8x8x128xbf16, #tpu.memory_space<vmem>>, %arg3: memref<8x128xf32, #tpu.memory_space<vmem>>, %arg4: memref<128x384xbf16, #tpu.memory_space<vmem>>, %arg5: memref<128x384xbf16, #tpu.memory_space<vmem>>, %arg6: memref<1x384xf32, #tpu.memory_space<vmem>>, %arg7: memref<1x128xf32, #tpu.memory_space<vmem>>, %arg8: memref<8x8x128xf32, #tpu.memory_space<vmem>>, %arg9: memref<8x8x384xf32, #tpu.memory_space<vmem>>, %arg10: memref<8x128xf32, #tpu.memory_space<vmem>>) attributes {dimension_semantics = [#tpu.dimension_semantics<parallel>, #tpu.dimension_semantics<arbitrary>], iteration_bounds = array<i64: 1, 1>, scalar_prefetch = 0 : i64, scratch_operands = 2 : i64, tpu.core_type = #tpu.core_type<tc>, window_params = [{transform_indices = @transform_0, window_bounds = array<i64: 8, 8, 128>}, {transform_indices = @transform_1, window_bounds = array<i64: 8, 128>}, {pipeline_mode = #tpu.pipeline_mode<synchronous>, transform_indices = @transform_2, window_bounds = array<i64: 128, 384>}, {pipeline_mode = #tpu.pipeline_mode<synchronous>, transform_indices = @transform_3, window_bounds = array<i64: 128, 384>}, {pipeline_mode = #tpu.pipeline_mode<synchronous>, transform_indices = @transform_4, window_bounds = array<i64: 1, 384>}, {pipeline_mode = #tpu.pipeline_mode<synchronous>, transform_indices = @transform_5, window_bounds = array<i64: 1, 128>}, {transform_indices = @transform_6, window_bounds = array<i64: 8, 8, 128>}]} {
    %c0_i32 = arith.constant 0 : i32
    %0 = arith.cmpi eq, %arg1, %c0_i32 : i32
    %1 = arith.extui %0 : i1 to i32
    %c0_i32_0 = arith.constant 0 : i32
    %2 = arith.cmpi ne, %1, %c0_i32_0 : i32
    scf.if %2 {
      %c0_75 = arith.constant 0 : index
      %c0_76 = arith.constant 0 : index
      %296 = vector.load %arg3[%c0_75, %c0_76] : memref<8x128xf32, #tpu.memory_space<vmem>>, vector<8x128xf32>
      %c0_77 = arith.constant 0 : index
      %c0_78 = arith.constant 0 : index
      %297 = vector.load %arg10[%c0_77, %c0_78] : memref<8x128xf32, #tpu.memory_space<vmem>>, vector<8x128xf32>
      tpu.vector_store %arg10[%c0_77, %c0_78], %296 {strides = array<i32>} : memref<8x128xf32, #tpu.memory_space<vmem>>, vector<8x128xf32>,
    } else {
    }
    %c0 = arith.constant 0 : index
    %c0_1 = arith.constant 0 : index
    %c0_2 = arith.constant 0 : index
    %3 = vector.load %arg2[%c0, %c0_1, %c0_2] : memref<8x8x128xbf16, #tpu.memory_space<vmem>>, vector<8x8x128xbf16>
    %4 = vector.shape_cast %3 : vector<8x8x128xbf16> to vector<64x128xbf16>
    %c0_3 = arith.constant 0 : index
    %c0_4 = arith.constant 0 : index
    %5 = vector.load %arg4[%c0_3, %c0_4] : memref<128x384xbf16, #tpu.memory_space<vmem>>, vector<128x384xbf16>
    %cst = arith.constant dense<0.000000e+00> : vector<64x384xf32>
    %6 = tpu.matmul %4, %5, %cst {dimension_numbers = #tpu.dot_dimension_numbers<[1], [0], [0], [1], [0, 0, 1, 1], [], []>} : vector<64x128xbf16>, vector<128x384xbf16>, vector<64x384xf32> -> vector<64x384xf32>
    %c0_5 = arith.constant 0 : index
    %c0_6 = arith.constant 0 : index
    %7 = vector.load %arg6[%c0_5, %c0_6] : memref<1x384xf32, #tpu.memory_space<vmem>>, vector<1x384xf32>
    %8 = vector.broadcast %7 : vector<1x384xf32> to vector<64x384xf32>
    %9 = arith.addf %6, %8 : vector<64x384xf32>
    %10 = vector.shape_cast %9 : vector<64x384xf32> to vector<8x8x384xf32>
    %c0_7 = arith.constant 0 : index
    %c0_8 = arith.constant 0 : index
    %c0_9 = arith.constant 0 : index
    %11 = vector.load %arg9[%c0_7, %c0_8, %c0_9] : memref<8x8x384xf32, #tpu.memory_space<vmem>>, vector<8x8x384xf32>
    tpu.vector_store %arg9[%c0_7, %c0_8, %c0_9], %10 {strides = array<i32>} : memref<8x8x384xf32, #tpu.memory_space<vmem>>, vector<8x8x384xf32>,
    %c0_10 = arith.constant 0 : index
    %c0_11 = arith.constant 0 : index
    %12 = vector.load %arg5[%c0_10, %c0_11] : memref<128x384xbf16, #tpu.memory_space<vmem>>, vector<128x384xbf16>
    %c0_12 = arith.constant 0 : index
    %c0_13 = arith.constant 0 : index
    %13 = vector.load %arg7[%c0_12, %c0_13] : memref<1x128xf32, #tpu.memory_space<vmem>>, vector<1x128xf32>
    %c0_14 = arith.constant 0 : index
    %c0_15 = arith.constant 0 : index
    %14 = vector.load %arg10[%c0_14, %c0_15] : memref<8x128xf32, #tpu.memory_space<vmem>>, vector<8x128xf32>
    %c0_i32_16 = arith.constant 0 : i32
    %15 = arith.index_cast %c0_i32_16 : i32 to index
    %c0_17 = arith.constant 0 : index
    %c0_18 = arith.constant 0 : index
    %16 = vector.load %arg9[%15, %c0_17, %c0_18] : memref<8x8x384xf32, #tpu.memory_space<vmem>>, vector<1x8x384xf32>
    %17 = vector.shape_cast %16 : vector<1x8x384xf32> to vector<8x384xf32>
    %18 = arith.truncf %14 : vector<8x128xf32> to vector<8x128xbf16>
    %cst_19 = arith.constant dense<0.000000e+00> : vector<8x384xf32>
    %19 = tpu.matmul %18, %12, %cst_19 {dimension_numbers = #tpu.dot_dimension_numbers<[1], [0], [0], [1], [0, 0, 1, 1], [], []>} : vector<8x128xbf16>, vector<128x384xbf16>, vector<8x384xf32> -> vector<8x384xf32>
    %20 = vector.extract_strided_slice %17 {offsets = [0, 0], sizes = [8, 128], strides = [1, 1]} : vector<8x384xf32> to vector<8x128xf32>
    %21 = vector.extract_strided_slice %19 {offsets = [0, 0], sizes = [8, 128], strides = [1, 1]} : vector<8x384xf32> to vector<8x128xf32>
    %22 = arith.addf %20, %21 : vector<8x128xf32>
    %23 = arith.negf %22 : vector<8x128xf32>
    %24 = math.exp %23 : vector<8x128xf32>
    %cst_20 = arith.constant 1.000000e+00 : f32
    %25 = vector.broadcast %cst_20 : f32 to vector<8x128xf32>
    %26 = arith.addf %25, %24 : vector<8x128xf32>
    %27 = arith.divf %25, %26 : vector<8x128xf32>
    %28 = vector.extract_strided_slice %17 {offsets = [0, 128], sizes = [8, 128], strides = [1, 1]} : vector<8x384xf32> to vector<8x128xf32>
    %29 = vector.extract_strided_slice %19 {offsets = [0, 128], sizes = [8, 128], strides = [1, 1]} : vector<8x384xf32> to vector<8x128xf32>
    %30 = arith.addf %28, %29 : vector<8x128xf32>
    %31 = arith.negf %30 : vector<8x128xf32>
    %32 = math.exp %31 : vector<8x128xf32>
    %cst_21 = arith.constant 1.000000e+00 : f32
    %33 = vector.broadcast %cst_21 : f32 to vector<8x128xf32>
    %34 = arith.addf %33, %32 : vector<8x128xf32>
    %35 = arith.divf %33, %34 : vector<8x128xf32>
    %36 = vector.extract_strided_slice %17 {offsets = [0, 256], sizes = [8, 128], strides = [1, 1]} : vector<8x384xf32> to vector<8x128xf32>
    %37 = vector.extract_strided_slice %19 {offsets = [0, 256], sizes = [8, 128], strides = [1, 1]} : vector<8x384xf32> to vector<8x128xf32>
    %38 = vector.broadcast %13 : vector<1x128xf32> to vector<8x128xf32>
    %39 = arith.addf %37, %38 : vector<8x128xf32>
    %40 = arith.mulf %27, %39 : vector<8x128xf32>
    %41 = arith.addf %36, %40 : vector<8x128xf32>
    %42 = math.tanh %41 : vector<8x128xf32>
    %43 = arith.subf %14, %42 : vector<8x128xf32>
    %44 = arith.mulf %35, %43 : vector<8x128xf32>
    %45 = arith.addf %42, %44 : vector<8x128xf32>
    %46 = arith.index_cast %c0_i32_16 : i32 to index
    %c0_22 = arith.constant 0 : index
    %c0_23 = arith.constant 0 : index
    %47 = vector.load %arg8[%46, %c0_22, %c0_23] : memref<8x8x128xf32, #tpu.memory_space<vmem>>, vector<1x8x128xf32>
    %48 = vector.shape_cast %47 : vector<1x8x128xf32> to vector<8x128xf32>
    %49 = vector.shape_cast %45 : vector<8x128xf32> to vector<1x8x128xf32>
    tpu.vector_store %arg8[%46, %c0_22, %c0_23], %49 {strides = array<i32>} : memref<8x8x128xf32, #tpu.memory_space<vmem>>, vector<1x8x128xf32>,
    %c1_i32 = arith.constant 1 : i32
    %50 = arith.index_cast %c1_i32 : i32 to index
    %c0_24 = arith.constant 0 : index
    %c0_25 = arith.constant 0 : index
    %51 = vector.load %arg9[%50, %c0_24, %c0_25] : memref<8x8x384xf32, #tpu.memory_space<vmem>>, vector<1x8x384xf32>
    %52 = vector.shape_cast %51 : vector<1x8x384xf32> to vector<8x384xf32>
    %53 = arith.truncf %45 : vector<8x128xf32> to vector<8x128xbf16>
    %cst_26 = arith.constant dense<0.000000e+00> : vector<8x384xf32>
    %54 = tpu.matmul %53, %12, %cst_26 {dimension_numbers = #tpu.dot_dimension_numbers<[1], [0], [0], [1], [0, 0, 1, 1], [], []>} : vector<8x128xbf16>, vector<128x384xbf16>, vector<8x384xf32> -> vector<8x384xf32>
    %55 = vector.extract_strided_slice %52 {offsets = [0, 0], sizes = [8, 128], strides = [1, 1]} : vector<8x384xf32> to vector<8x128xf32>
    %56 = vector.extract_strided_slice %54 {offsets = [0, 0], sizes = [8, 128], strides = [1, 1]} : vector<8x384xf32> to vector<8x128xf32>
    %57 = arith.addf %55, %56 : vector<8x128xf32>
    %58 = arith.negf %57 : vector<8x128xf32>
    %59 = math.exp %58 : vector<8x128xf32>
    %cst_27 = arith.constant 1.000000e+00 : f32
    %60 = vector.broadcast %cst_27 : f32 to vector<8x128xf32>
    %61 = arith.addf %60, %59 : vector<8x128xf32>
    %62 = arith.divf %60, %61 : vector<8x128xf32>
    %63 = vector.extract_strided_slice %52 {offsets = [0, 128], sizes = [8, 128], strides = [1, 1]} : vector<8x384xf32> to vector<8x128xf32>
    %64 = vector.extract_strided_slice %54 {offsets = [0, 128], sizes = [8, 128], strides = [1, 1]} : vector<8x384xf32> to vector<8x128xf32>
    %65 = arith.addf %63, %64 : vector<8x128xf32>
    %66 = arith.negf %65 : vector<8x128xf32>
    %67 = math.exp %66 : vector<8x128xf32>
    %cst_28 = arith.constant 1.000000e+00 : f32
    %68 = vector.broadcast %cst_28 : f32 to vector<8x128xf32>
    %69 = arith.addf %68, %67 : vector<8x128xf32>
    %70 = arith.divf %68, %69 : vector<8x128xf32>
    %71 = vector.extract_strided_slice %52 {offsets = [0, 256], sizes = [8, 128], strides = [1, 1]} : vector<8x384xf32> to vector<8x128xf32>
    %72 = vector.extract_strided_slice %54 {offsets = [0, 256], sizes = [8, 128], strides = [1, 1]} : vector<8x384xf32> to vector<8x128xf32>
    %73 = vector.broadcast %13 : vector<1x128xf32> to vector<8x128xf32>
    %74 = arith.addf %72, %73 : vector<8x128xf32>
    %75 = arith.mulf %62, %74 : vector<8x128xf32>
    %76 = arith.addf %71, %75 : vector<8x128xf32>
    %77 = math.tanh %76 : vector<8x128xf32>
    %78 = arith.subf %45, %77 : vector<8x128xf32>
    %79 = arith.mulf %70, %78 : vector<8x128xf32>
    %80 = arith.addf %77, %79 : vector<8x128xf32>
    %81 = arith.index_cast %c1_i32 : i32 to index
    %c0_29 = arith.constant 0 : index
    %c0_30 = arith.constant 0 : index
    %82 = vector.load %arg8[%81, %c0_29, %c0_30] : memref<8x8x128xf32, #tpu.memory_space<vmem>>, vector<1x8x128xf32>
    %83 = vector.shape_cast %82 : vector<1x8x128xf32> to vector<8x128xf32>
    %84 = vector.shape_cast %80 : vector<8x128xf32> to vector<1x8x128xf32>
    tpu.vector_store %arg8[%81, %c0_29, %c0_30], %84 {strides = array<i32>} : memref<8x8x128xf32, #tpu.memory_space<vmem>>, vector<1x8x128xf32>,
    %c2_i32 = arith.constant 2 : i32
    %85 = arith.index_cast %c2_i32 : i32 to index
    %c0_31 = arith.constant 0 : index
    %c0_32 = arith.constant 0 : index
    %86 = vector.load %arg9[%85, %c0_31, %c0_32] : memref<8x8x384xf32, #tpu.memory_space<vmem>>, vector<1x8x384xf32>
    %87 = vector.shape_cast %86 : vector<1x8x384xf32> to vector<8x384xf32>
    %88 = arith.truncf %80 : vector<8x128xf32> to vector<8x128xbf16>
    %cst_33 = arith.constant dense<0.000000e+00> : vector<8x384xf32>
    %89 = tpu.matmul %88, %12, %cst_33 {dimension_numbers = #tpu.dot_dimension_numbers<[1], [0], [0], [1], [0, 0, 1, 1], [], []>} : vector<8x128xbf16>, vector<128x384xbf16>, vector<8x384xf32> -> vector<8x384xf32>
    %90 = vector.extract_strided_slice %87 {offsets = [0, 0], sizes = [8, 128], strides = [1, 1]} : vector<8x384xf32> to vector<8x128xf32>
    %91 = vector.extract_strided_slice %89 {offsets = [0, 0], sizes = [8, 128], strides = [1, 1]} : vector<8x384xf32> to vector<8x128xf32>
    %92 = arith.addf %90, %91 : vector<8x128xf32>
    %93 = arith.negf %92 : vector<8x128xf32>
    %94 = math.exp %93 : vector<8x128xf32>
    %cst_34 = arith.constant 1.000000e+00 : f32
    %95 = vector.broadcast %cst_34 : f32 to vector<8x128xf32>
    %96 = arith.addf %95, %94 : vector<8x128xf32>
    %97 = arith.divf %95, %96 : vector<8x128xf32>
    %98 = vector.extract_strided_slice %87 {offsets = [0, 128], sizes = [8, 128], strides = [1, 1]} : vector<8x384xf32> to vector<8x128xf32>
    %99 = vector.extract_strided_slice %89 {offsets = [0, 128], sizes = [8, 128], strides = [1, 1]} : vector<8x384xf32> to vector<8x128xf32>
    %100 = arith.addf %98, %99 : vector<8x128xf32>
    %101 = arith.negf %100 : vector<8x128xf32>
    %102 = math.exp %101 : vector<8x128xf32>
    %cst_35 = arith.constant 1.000000e+00 : f32
    %103 = vector.broadcast %cst_35 : f32 to vector<8x128xf32>
    %104 = arith.addf %103, %102 : vector<8x128xf32>
    %105 = arith.divf %103, %104 : vector<8x128xf32>
    %106 = vector.extract_strided_slice %87 {offsets = [0, 256], sizes = [8, 128], strides = [1, 1]} : vector<8x384xf32> to vector<8x128xf32>
    %107 = vector.extract_strided_slice %89 {offsets = [0, 256], sizes = [8, 128], strides = [1, 1]} : vector<8x384xf32> to vector<8x128xf32>
    %108 = vector.broadcast %13 : vector<1x128xf32> to vector<8x128xf32>
    %109 = arith.addf %107, %108 : vector<8x128xf32>
    %110 = arith.mulf %97, %109 : vector<8x128xf32>
    %111 = arith.addf %106, %110 : vector<8x128xf32>
    %112 = math.tanh %111 : vector<8x128xf32>
    %113 = arith.subf %80, %112 : vector<8x128xf32>
    %114 = arith.mulf %105, %113 : vector<8x128xf32>
    %115 = arith.addf %112, %114 : vector<8x128xf32>
    %116 = arith.index_cast %c2_i32 : i32 to index
    %c0_36 = arith.constant 0 : index
    %c0_37 = arith.constant 0 : index
    %117 = vector.load %arg8[%116, %c0_36, %c0_37] : memref<8x8x128xf32, #tpu.memory_space<vmem>>, vector<1x8x128xf32>
    %118 = vector.shape_cast %117 : vector<1x8x128xf32> to vector<8x128xf32>
    %119 = vector.shape_cast %115 : vector<8x128xf32> to vector<1x8x128xf32>
    tpu.vector_store %arg8[%116, %c0_36, %c0_37], %119 {strides = array<i32>} : memref<8x8x128xf32, #tpu.memory_space<vmem>>, vector<1x8x128xf32>,
    %c3_i32 = arith.constant 3 : i32
    %120 = arith.index_cast %c3_i32 : i32 to index
    %c0_38 = arith.constant 0 : index
    %c0_39 = arith.constant 0 : index
    %121 = vector.load %arg9[%120, %c0_38, %c0_39] : memref<8x8x384xf32, #tpu.memory_space<vmem>>, vector<1x8x384xf32>
    %122 = vector.shape_cast %121 : vector<1x8x384xf32> to vector<8x384xf32>
    %123 = arith.truncf %115 : vector<8x128xf32> to vector<8x128xbf16>
    %cst_40 = arith.constant dense<0.000000e+00> : vector<8x384xf32>
    %124 = tpu.matmul %123, %12, %cst_40 {dimension_numbers = #tpu.dot_dimension_numbers<[1], [0], [0], [1], [0, 0, 1, 1], [], []>} : vector<8x128xbf16>, vector<128x384xbf16>, vector<8x384xf32> -> vector<8x384xf32>
    %125 = vector.extract_strided_slice %122 {offsets = [0, 0], sizes = [8, 128], strides = [1, 1]} : vector<8x384xf32> to vector<8x128xf32>
    %126 = vector.extract_strided_slice %124 {offsets = [0, 0], sizes = [8, 128], strides = [1, 1]} : vector<8x384xf32> to vector<8x128xf32>
    %127 = arith.addf %125, %126 : vector<8x128xf32>
    %128 = arith.negf %127 : vector<8x128xf32>
    %129 = math.exp %128 : vector<8x128xf32>
    %cst_41 = arith.constant 1.000000e+00 : f32
    %130 = vector.broadcast %cst_41 : f32 to vector<8x128xf32>
    %131 = arith.addf %130, %129 : vector<8x128xf32>
    %132 = arith.divf %130, %131 : vector<8x128xf32>
    %133 = vector.extract_strided_slice %122 {offsets = [0, 128], sizes = [8, 128], strides = [1, 1]} : vector<8x384xf32> to vector<8x128xf32>
    %134 = vector.extract_strided_slice %124 {offsets = [0, 128], sizes = [8, 128], strides = [1, 1]} : vector<8x384xf32> to vector<8x128xf32>
    %135 = arith.addf %133, %134 : vector<8x128xf32>
    %136 = arith.negf %135 : vector<8x128xf32>
    %137 = math.exp %136 : vector<8x128xf32>
    %cst_42 = arith.constant 1.000000e+00 : f32
    %138 = vector.broadcast %cst_42 : f32 to vector<8x128xf32>
    %139 = arith.addf %138, %137 : vector<8x128xf32>
    %140 = arith.divf %138, %139 : vector<8x128xf32>
    %141 = vector.extract_strided_slice %122 {offsets = [0, 256], sizes = [8, 128], strides = [1, 1]} : vector<8x384xf32> to vector<8x128xf32>
    %142 = vector.extract_strided_slice %124 {offsets = [0, 256], sizes = [8, 128], strides = [1, 1]} : vector<8x384xf32> to vector<8x128xf32>
    %143 = vector.broadcast %13 : vector<1x128xf32> to vector<8x128xf32>
    %144 = arith.addf %142, %143 : vector<8x128xf32>
    %145 = arith.mulf %132, %144 : vector<8x128xf32>
    %146 = arith.addf %141, %145 : vector<8x128xf32>
    %147 = math.tanh %146 : vector<8x128xf32>
    %148 = arith.subf %115, %147 : vector<8x128xf32>
    %149 = arith.mulf %140, %148 : vector<8x128xf32>
    %150 = arith.addf %147, %149 : vector<8x128xf32>
    %151 = arith.index_cast %c3_i32 : i32 to index
    %c0_43 = arith.constant 0 : index
    %c0_44 = arith.constant 0 : index
    %152 = vector.load %arg8[%151, %c0_43, %c0_44] : memref<8x8x128xf32, #tpu.memory_space<vmem>>, vector<1x8x128xf32>
    %153 = vector.shape_cast %152 : vector<1x8x128xf32> to vector<8x128xf32>
    %154 = vector.shape_cast %150 : vector<8x128xf32> to vector<1x8x128xf32>
    tpu.vector_store %arg8[%151, %c0_43, %c0_44], %154 {strides = array<i32>} : memref<8x8x128xf32, #tpu.memory_space<vmem>>, vector<1x8x128xf32>,
    %c4_i32 = arith.constant 4 : i32
    %155 = arith.index_cast %c4_i32 : i32 to index
    %c0_45 = arith.constant 0 : index
    %c0_46 = arith.constant 0 : index
    %156 = vector.load %arg9[%155, %c0_45, %c0_46] : memref<8x8x384xf32, #tpu.memory_space<vmem>>, vector<1x8x384xf32>
    %157 = vector.shape_cast %156 : vector<1x8x384xf32> to vector<8x384xf32>
    %158 = arith.truncf %150 : vector<8x128xf32> to vector<8x128xbf16>
    %cst_47 = arith.constant dense<0.000000e+00> : vector<8x384xf32>
    %159 = tpu.matmul %158, %12, %cst_47 {dimension_numbers = #tpu.dot_dimension_numbers<[1], [0], [0], [1], [0, 0, 1, 1], [], []>} : vector<8x128xbf16>, vector<128x384xbf16>, vector<8x384xf32> -> vector<8x384xf32>
    %160 = vector.extract_strided_slice %157 {offsets = [0, 0], sizes = [8, 128], strides = [1, 1]} : vector<8x384xf32> to vector<8x128xf32>
    %161 = vector.extract_strided_slice %159 {offsets = [0, 0], sizes = [8, 128], strides = [1, 1]} : vector<8x384xf32> to vector<8x128xf32>
    %162 = arith.addf %160, %161 : vector<8x128xf32>
    %163 = arith.negf %162 : vector<8x128xf32>
    %164 = math.exp %163 : vector<8x128xf32>
    %cst_48 = arith.constant 1.000000e+00 : f32
    %165 = vector.broadcast %cst_48 : f32 to vector<8x128xf32>
    %166 = arith.addf %165, %164 : vector<8x128xf32>
    %167 = arith.divf %165, %166 : vector<8x128xf32>
    %168 = vector.extract_strided_slice %157 {offsets = [0, 128], sizes = [8, 128], strides = [1, 1]} : vector<8x384xf32> to vector<8x128xf32>
    %169 = vector.extract_strided_slice %159 {offsets = [0, 128], sizes = [8, 128], strides = [1, 1]} : vector<8x384xf32> to vector<8x128xf32>
    %170 = arith.addf %168, %169 : vector<8x128xf32>
    %171 = arith.negf %170 : vector<8x128xf32>
    %172 = math.exp %171 : vector<8x128xf32>
    %cst_49 = arith.constant 1.000000e+00 : f32
    %173 = vector.broadcast %cst_49 : f32 to vector<8x128xf32>
    %174 = arith.addf %173, %172 : vector<8x128xf32>
    %175 = arith.divf %173, %174 : vector<8x128xf32>
    %176 = vector.extract_strided_slice %157 {offsets = [0, 256], sizes = [8, 128], strides = [1, 1]} : vector<8x384xf32> to vector<8x128xf32>
    %177 = vector.extract_strided_slice %159 {offsets = [0, 256], sizes = [8, 128], strides = [1, 1]} : vector<8x384xf32> to vector<8x128xf32>
    %178 = vector.broadcast %13 : vector<1x128xf32> to vector<8x128xf32>
    %179 = arith.addf %177, %178 : vector<8x128xf32>
    %180 = arith.mulf %167, %179 : vector<8x128xf32>
    %181 = arith.addf %176, %180 : vector<8x128xf32>
    %182 = math.tanh %181 : vector<8x128xf32>
    %183 = arith.subf %150, %182 : vector<8x128xf32>
    %184 = arith.mulf %175, %183 : vector<8x128xf32>
    %185 = arith.addf %182, %184 : vector<8x128xf32>
    %186 = arith.index_cast %c4_i32 : i32 to index
    %c0_50 = arith.constant 0 : index
    %c0_51 = arith.constant 0 : index
    %187 = vector.load %arg8[%186, %c0_50, %c0_51] : memref<8x8x128xf32, #tpu.memory_space<vmem>>, vector<1x8x128xf32>
    %188 = vector.shape_cast %187 : vector<1x8x128xf32> to vector<8x128xf32>
    %189 = vector.shape_cast %185 : vector<8x128xf32> to vector<1x8x128xf32>
    tpu.vector_store %arg8[%186, %c0_50, %c0_51], %189 {strides = array<i32>} : memref<8x8x128xf32, #tpu.memory_space<vmem>>, vector<1x8x128xf32>,
    %c5_i32 = arith.constant 5 : i32
    %190 = arith.index_cast %c5_i32 : i32 to index
    %c0_52 = arith.constant 0 : index
    %c0_53 = arith.constant 0 : index
    %191 = vector.load %arg9[%190, %c0_52, %c0_53] : memref<8x8x384xf32, #tpu.memory_space<vmem>>, vector<1x8x384xf32>
    %192 = vector.shape_cast %191 : vector<1x8x384xf32> to vector<8x384xf32>
    %193 = arith.truncf %185 : vector<8x128xf32> to vector<8x128xbf16>
    %cst_54 = arith.constant dense<0.000000e+00> : vector<8x384xf32>
    %194 = tpu.matmul %193, %12, %cst_54 {dimension_numbers = #tpu.dot_dimension_numbers<[1], [0], [0], [1], [0, 0, 1, 1], [], []>} : vector<8x128xbf16>, vector<128x384xbf16>, vector<8x384xf32> -> vector<8x384xf32>
    %195 = vector.extract_strided_slice %192 {offsets = [0, 0], sizes = [8, 128], strides = [1, 1]} : vector<8x384xf32> to vector<8x128xf32>
    %196 = vector.extract_strided_slice %194 {offsets = [0, 0], sizes = [8, 128], strides = [1, 1]} : vector<8x384xf32> to vector<8x128xf32>
    %197 = arith.addf %195, %196 : vector<8x128xf32>
    %198 = arith.negf %197 : vector<8x128xf32>
    %199 = math.exp %198 : vector<8x128xf32>
    %cst_55 = arith.constant 1.000000e+00 : f32
    %200 = vector.broadcast %cst_55 : f32 to vector<8x128xf32>
    %201 = arith.addf %200, %199 : vector<8x128xf32>
    %202 = arith.divf %200, %201 : vector<8x128xf32>
    %203 = vector.extract_strided_slice %192 {offsets = [0, 128], sizes = [8, 128], strides = [1, 1]} : vector<8x384xf32> to vector<8x128xf32>
    %204 = vector.extract_strided_slice %194 {offsets = [0, 128], sizes = [8, 128], strides = [1, 1]} : vector<8x384xf32> to vector<8x128xf32>
    %205 = arith.addf %203, %204 : vector<8x128xf32>
    %206 = arith.negf %205 : vector<8x128xf32>
    %207 = math.exp %206 : vector<8x128xf32>
    %cst_56 = arith.constant 1.000000e+00 : f32
    %208 = vector.broadcast %cst_56 : f32 to vector<8x128xf32>
    %209 = arith.addf %208, %207 : vector<8x128xf32>
    %210 = arith.divf %208, %209 : vector<8x128xf32>
    %211 = vector.extract_strided_slice %192 {offsets = [0, 256], sizes = [8, 128], strides = [1, 1]} : vector<8x384xf32> to vector<8x128xf32>
    %212 = vector.extract_strided_slice %194 {offsets = [0, 256], sizes = [8, 128], strides = [1, 1]} : vector<8x384xf32> to vector<8x128xf32>
    %213 = vector.broadcast %13 : vector<1x128xf32> to vector<8x128xf32>
    %214 = arith.addf %212, %213 : vector<8x128xf32>
    %215 = arith.mulf %202, %214 : vector<8x128xf32>
    %216 = arith.addf %211, %215 : vector<8x128xf32>
    %217 = math.tanh %216 : vector<8x128xf32>
    %218 = arith.subf %185, %217 : vector<8x128xf32>
    %219 = arith.mulf %210, %218 : vector<8x128xf32>
    %220 = arith.addf %217, %219 : vector<8x128xf32>
    %221 = arith.index_cast %c5_i32 : i32 to index
    %c0_57 = arith.constant 0 : index
    %c0_58 = arith.constant 0 : index
    %222 = vector.load %arg8[%221, %c0_57, %c0_58] : memref<8x8x128xf32, #tpu.memory_space<vmem>>, vector<1x8x128xf32>
    %223 = vector.shape_cast %222 : vector<1x8x128xf32> to vector<8x128xf32>
    %224 = vector.shape_cast %220 : vector<8x128xf32> to vector<1x8x128xf32>
    tpu.vector_store %arg8[%221, %c0_57, %c0_58], %224 {strides = array<i32>} : memref<8x8x128xf32, #tpu.memory_space<vmem>>, vector<1x8x128xf32>,
    %c6_i32 = arith.constant 6 : i32
    %225 = arith.index_cast %c6_i32 : i32 to index
    %c0_59 = arith.constant 0 : index
    %c0_60 = arith.constant 0 : index
    %226 = vector.load %arg9[%225, %c0_59, %c0_60] : memref<8x8x384xf32, #tpu.memory_space<vmem>>, vector<1x8x384xf32>
    %227 = vector.shape_cast %226 : vector<1x8x384xf32> to vector<8x384xf32>
    %228 = arith.truncf %220 : vector<8x128xf32> to vector<8x128xbf16>
    %cst_61 = arith.constant dense<0.000000e+00> : vector<8x384xf32>
    %229 = tpu.matmul %228, %12, %cst_61 {dimension_numbers = #tpu.dot_dimension_numbers<[1], [0], [0], [1], [0, 0, 1, 1], [], []>} : vector<8x128xbf16>, vector<128x384xbf16>, vector<8x384xf32> -> vector<8x384xf32>
    %230 = vector.extract_strided_slice %227 {offsets = [0, 0], sizes = [8, 128], strides = [1, 1]} : vector<8x384xf32> to vector<8x128xf32>
    %231 = vector.extract_strided_slice %229 {offsets = [0, 0], sizes = [8, 128], strides = [1, 1]} : vector<8x384xf32> to vector<8x128xf32>
    %232 = arith.addf %230, %231 : vector<8x128xf32>
    %233 = arith.negf %232 : vector<8x128xf32>
    %234 = math.exp %233 : vector<8x128xf32>
    %cst_62 = arith.constant 1.000000e+00 : f32
    %235 = vector.broadcast %cst_62 : f32 to vector<8x128xf32>
    %236 = arith.addf %235, %234 : vector<8x128xf32>
    %237 = arith.divf %235, %236 : vector<8x128xf32>
    %238 = vector.extract_strided_slice %227 {offsets = [0, 128], sizes = [8, 128], strides = [1, 1]} : vector<8x384xf32> to vector<8x128xf32>
    %239 = vector.extract_strided_slice %229 {offsets = [0, 128], sizes = [8, 128], strides = [1, 1]} : vector<8x384xf32> to vector<8x128xf32>
    %240 = arith.addf %238, %239 : vector<8x128xf32>
    %241 = arith.negf %240 : vector<8x128xf32>
    %242 = math.exp %241 : vector<8x128xf32>
    %cst_63 = arith.constant 1.000000e+00 : f32
    %243 = vector.broadcast %cst_63 : f32 to vector<8x128xf32>
    %244 = arith.addf %243, %242 : vector<8x128xf32>
    %245 = arith.divf %243, %244 : vector<8x128xf32>
    %246 = vector.extract_strided_slice %227 {offsets = [0, 256], sizes = [8, 128], strides = [1, 1]} : vector<8x384xf32> to vector<8x128xf32>
    %247 = vector.extract_strided_slice %229 {offsets = [0, 256], sizes = [8, 128], strides = [1, 1]} : vector<8x384xf32> to vector<8x128xf32>
    %248 = vector.broadcast %13 : vector<1x128xf32> to vector<8x128xf32>
    %249 = arith.addf %247, %248 : vector<8x128xf32>
    %250 = arith.mulf %237, %249 : vector<8x128xf32>
    %251 = arith.addf %246, %250 : vector<8x128xf32>
    %252 = math.tanh %251 : vector<8x128xf32>
    %253 = arith.subf %220, %252 : vector<8x128xf32>
    %254 = arith.mulf %245, %253 : vector<8x128xf32>
    %255 = arith.addf %252, %254 : vector<8x128xf32>
    %256 = arith.index_cast %c6_i32 : i32 to index
    %c0_64 = arith.constant 0 : index
    %c0_65 = arith.constant 0 : index
    %257 = vector.load %arg8[%256, %c0_64, %c0_65] : memref<8x8x128xf32, #tpu.memory_space<vmem>>, vector<1x8x128xf32>
    %258 = vector.shape_cast %257 : vector<1x8x128xf32> to vector<8x128xf32>
    %259 = vector.shape_cast %255 : vector<8x128xf32> to vector<1x8x128xf32>
    tpu.vector_store %arg8[%256, %c0_64, %c0_65], %259 {strides = array<i32>} : memref<8x8x128xf32, #tpu.memory_space<vmem>>, vector<1x8x128xf32>,
    %c7_i32 = arith.constant 7 : i32
    %260 = arith.index_cast %c7_i32 : i32 to index
    %c0_66 = arith.constant 0 : index
    %c0_67 = arith.constant 0 : index
    %261 = vector.load %arg9[%260, %c0_66, %c0_67] : memref<8x8x384xf32, #tpu.memory_space<vmem>>, vector<1x8x384xf32>
    %262 = vector.shape_cast %261 : vector<1x8x384xf32> to vector<8x384xf32>
    %263 = arith.truncf %255 : vector<8x128xf32> to vector<8x128xbf16>
    %cst_68 = arith.constant dense<0.000000e+00> : vector<8x384xf32>
    %264 = tpu.matmul %263, %12, %cst_68 {dimension_numbers = #tpu.dot_dimension_numbers<[1], [0], [0], [1], [0, 0, 1, 1], [], []>} : vector<8x128xbf16>, vector<128x384xbf16>, vector<8x384xf32> -> vector<8x384xf32>
    %265 = vector.extract_strided_slice %262 {offsets = [0, 0], sizes = [8, 128], strides = [1, 1]} : vector<8x384xf32> to vector<8x128xf32>
    %266 = vector.extract_strided_slice %264 {offsets = [0, 0], sizes = [8, 128], strides = [1, 1]} : vector<8x384xf32> to vector<8x128xf32>
    %267 = arith.addf %265, %266 : vector<8x128xf32>
    %268 = arith.negf %267 : vector<8x128xf32>
    %269 = math.exp %268 : vector<8x128xf32>
    %cst_69 = arith.constant 1.000000e+00 : f32
    %270 = vector.broadcast %cst_69 : f32 to vector<8x128xf32>
    %271 = arith.addf %270, %269 : vector<8x128xf32>
    %272 = arith.divf %270, %271 : vector<8x128xf32>
    %273 = vector.extract_strided_slice %262 {offsets = [0, 128], sizes = [8, 128], strides = [1, 1]} : vector<8x384xf32> to vector<8x128xf32>
    %274 = vector.extract_strided_slice %264 {offsets = [0, 128], sizes = [8, 128], strides = [1, 1]} : vector<8x384xf32> to vector<8x128xf32>
    %275 = arith.addf %273, %274 : vector<8x128xf32>
    %276 = arith.negf %275 : vector<8x128xf32>
    %277 = math.exp %276 : vector<8x128xf32>
    %cst_70 = arith.constant 1.000000e+00 : f32
    %278 = vector.broadcast %cst_70 : f32 to vector<8x128xf32>
    %279 = arith.addf %278, %277 : vector<8x128xf32>
    %280 = arith.divf %278, %279 : vector<8x128xf32>
    %281 = vector.extract_strided_slice %262 {offsets = [0, 256], sizes = [8, 128], strides = [1, 1]} : vector<8x384xf32> to vector<8x128xf32>
    %282 = vector.extract_strided_slice %264 {offsets = [0, 256], sizes = [8, 128], strides = [1, 1]} : vector<8x384xf32> to vector<8x128xf32>
    %283 = vector.broadcast %13 : vector<1x128xf32> to vector<8x128xf32>
    %284 = arith.addf %282, %283 : vector<8x128xf32>
    %285 = arith.mulf %272, %284 : vector<8x128xf32>
    %286 = arith.addf %281, %285 : vector<8x128xf32>
    %287 = math.tanh %286 : vector<8x128xf32>
    %288 = arith.subf %255, %287 : vector<8x128xf32>
    %289 = arith.mulf %280, %288 : vector<8x128xf32>
    %290 = arith.addf %287, %289 : vector<8x128xf32>
    %291 = arith.index_cast %c7_i32 : i32 to index
    %c0_71 = arith.constant 0 : index
    %c0_72 = arith.constant 0 : index
    %292 = vector.load %arg8[%291, %c0_71, %c0_72] : memref<8x8x128xf32, #tpu.memory_space<vmem>>, vector<1x8x128xf32>
    %293 = vector.shape_cast %292 : vector<1x8x128xf32> to vector<8x128xf32>
    %294 = vector.shape_cast %290 : vector<8x128xf32> to vector<1x8x128xf32>
    tpu.vector_store %arg8[%291, %c0_71, %c0_72], %294 {strides = array<i32>} : memref<8x8x128xf32, #tpu.memory_space<vmem>>, vector<1x8x128xf32>,
    %c8_i32 = arith.constant 8 : i32
    %c0_73 = arith.constant 0 : index
    %c0_74 = arith.constant 0 : index
    %295 = vector.load %arg10[%c0_73, %c0_74] : memref<8x128xf32, #tpu.memory_space<vmem>>, vector<8x128xf32>
    tpu.vector_store %arg10[%c0_73, %c0_74], %290 {strides = array<i32>} : memref<8x128xf32, #tpu.memory_space<vmem>>, vector<8x128xf32>,
    return
  }
  func.func @transform_0(%arg0: i32, %arg1: i32) -> (i32, i32, i32) {
    %c0_i32 = arith.constant 0 : i32
    %c0_i32_0 = arith.constant 0 : i32
    return %arg1, %arg0, %c0_i32 : i32, i32, i32
  }
  func.func @transform_1(%arg0: i32, %arg1: i32) -> (i32, i32) {
    %c0_i32 = arith.constant 0 : i32
    %c0_i32_0 = arith.constant 0 : i32
    return %arg0, %c0_i32 : i32, i32
  }
  func.func @transform_2(%arg0: i32, %arg1: i32) -> (i32, i32) {
    %c0_i32 = arith.constant 0 : i32
    %c0_i32_0 = arith.constant 0 : i32
    %c0_i32_1 = arith.constant 0 : i32
    return %c0_i32, %c0_i32_0 : i32, i32
  }
  func.func @transform_3(%arg0: i32, %arg1: i32) -> (i32, i32) {
    %c0_i32 = arith.constant 0 : i32
    %c0_i32_0 = arith.constant 0 : i32
    %c0_i32_1 = arith.constant 0 : i32
    return %c0_i32, %c0_i32_0 : i32, i32
  }
  func.func @transform_4(%arg0: i32, %arg1: i32) -> (i32, i32) {
    %c0_i32 = arith.constant 0 : i32
    %c0_i32_0 = arith.constant 0 : i32
    %c0_i32_1 = arith.constant 0 : i32
    return %c0_i32, %c0_i32_0 : i32, i32
  }
  func.func @transform_5(%arg0: i32, %arg1: i32) -> (i32, i32) {
    %c0_i32 = arith.constant 0 : i32
    %c0_i32_0 = arith.constant 0 : i32
    %c0_i32_1 = arith.constant 0 : i32
    return %c0_i32, %c0_i32_0 : i32, i32
  }
  func.func @transform_6(%arg0: i32, %arg1: i32) -> (i32, i32, i32) {
    %c0_i32 = arith.constant 0 : i32
    %c0_i32_0 = arith.constant 0 : i32
    return %arg1, %arg0, %c0_i32 : i32, i32, i32
  }
}

</mosaic_0001>

<bundles_post_ra>
// kernel: tpu_custom_call.1
= control target key start
LH: loop header
LB: loop body
LE: loop exit
PB: predicated region body
PF: predicated region fallthrough
CT: control target
= control target key end

     0   :  { %11 = vsyncpa [#allocation5], 0  ;;  %s2275_s0 = inlined_call_operand.hbm [shape: bf16[8,8,128], index: 0, kind: input, shape index: {}]   ;;  %s2276_s1 = inlined_call_operand.hbm [shape: f32[8,128], index: 1, kind: input, shape index: {}]   ;;  %s2277_s2 = inlined_call_operand.hbm [shape: bf16[128,384], index: 2, kind: input, shape index: {}]   ;;  %s2278_s3 = inlined_call_operand.hbm [shape: bf16[128,384], index: 3, kind: input, shape index: {}]   ;;  %s2279_s4 = inlined_call_operand.vmem [shape: f32[1,384], index: 4, kind: input, shape index: {}]   ;;  %s2280_s5 = inlined_call_operand.vmem [shape: f32[1,128], index: 5, kind: input, shape index: {}]   ;;  %s2281_s6 = inlined_call_operand.hbm [shape: f32[8,8,128], index: 6, kind: output, shape index: {}]  }
   0x1   :  { %12 = vsyncpa [#allocation8], 0 }
   0x2   :  { %13 = vsyncpa [#allocation11], 0  ;;  %s33_s23 = sshll.u32 %s2276_s1, 4  ;;  %s34_s23 = int_to_ptr.hbm [resolvable:$true] %s33_s23 }
   0x3   :  { %14 = vsyncpa [#allocation6], 0  ;;  %s1828_s24 = smov [#allocation7]   ;;  %s19_s28 = sshll.u32 %s2275_s0, 4  ;;  %s20_s28 = int_to_ptr.hbm [resolvable:$true] %s19_s28 }
   0x4   :  { %s35_s25 = sshll.u32 %s1828_s24, 4  ;;  %s1829_s29 = smov [#allocation4]   ;;  %s36_s25 = int_to_ptr.vmem [resolvable:$true] %s35_s25 }
   0x5   :  { %38 = dma.hbm_to_vmem [thread:$0]  %s34_s23, 128, %s36_s25, [#allocation8]  }
   0x6   :  { %s21_s30 = sshll.u32 %s1829_s29, 4  ;;  %s1830_s7 = smov 64   ;;  %s22_s30 = int_to_ptr.vmem [resolvable:$true] %s21_s30 }
   0x7   :  { %s1831_s8 = smov 4   ;;  %s43_s1 = sshll.u32 %s2277_s2, 4  ;;  %s44_s1 = int_to_ptr.hbm [resolvable:$true] %s43_s1 }
   0x8   :  { %27 = dma.hbm_to_vmem [thread:$0]  %s20_s28, 512, %s22_s30, [#allocation5], %s1830_s7, %s1830_s7, %s1831_s8  }
   0x9   :  { %s1832_s11 = smov [#allocation9]   ;;  %s56_s0 = sshll.u32 %s2278_s3, 4  ;;  %s57_s0 = int_to_ptr.hbm [resolvable:$true] %s56_s0 }
   0xa   :  { %s45_s12 = sshll.u32 %s1832_s11, 4  ;;  %s1833_s15 = smov 192   ;;  %s46_s12 = int_to_ptr.vmem [resolvable:$true] %s45_s12 }
   0xb   :  { %s1834_s16 = smov 12   ;;  %s1835_s17 = smov [#allocation10]  }
   0xc   :  { %51 = dma.hbm_to_vmem [thread:$0]  %s44_s1, 3072, %s46_s12, [#allocation8], %s1833_s15, %s1833_s15, %s1834_s16  }
   0xd   :  { %s58_s18 = sshll.u32 %s1835_s17, 4  ;;  %s59_s18 = int_to_ptr.vmem [resolvable:$true] %s58_s18 }
   0xe   :  { %64 = dma.hbm_to_vmem [thread:$0]  %s57_s0, 3072, %s59_s18, [#allocation11], %s1833_s15, %s1833_s15, %s1834_s16  }
   0xf   :  { %1820 = dma.done.wait [#allocation5], 512  }
  0x10   :  { %1821 = vsyncadd [#allocation5], 4294966784 }
  0x11   :  { %1822 = dma.done.wait [#allocation8], 3200  }
  0x12   :  { %1823 = vsyncadd [#allocation8], 4294964096 }
  0x13   :  { %1824 = dma.done.wait [#allocation11], 3072  }
  0x14   :  { %1825 = vsyncadd [#allocation11], 4294964224  ;;  %v1433_v0 = vld [vmem:[#allocation9 + $0xa8] sm:$0xf]  ;;  %v1581_v1 = vld [vmem:[#allocation9 + $0xb0] sm:$0xf0] }
  0x15   :  { %v1529_v2 = vld [vmem:[#allocation10 + $0xa8] sm:$0xf]  ;;  %v1434_v3 = vor.u32 %v1581_v1, %v1433_v0  ;;  %v1605_v4 = vld [vmem:[#allocation10 + $0xb0] sm:$0xf0]  ;;  %v1421_v5 = vld [vmem:[#allocation9 + $0x90] sm:$0xf] }
  0x16   :  { %v1578_v6 = vld [vmem:[#allocation9 + $0x98] sm:$0xf0]  ;;  %v1886_v7 = vor.u32 %v1605_v4, %v1529_v2  ;;  %v1517_v8 = vld [vmem:[#allocation10 + $0x90] sm:$0xf]  ;;  %v1409_v12 = vld [vmem:[#allocation9 + $0x78] sm:$0xf] }
  0x17   :  { %v1602_v9 = vld [vmem:[#allocation10 + $0x98] sm:$0xf0]  ;;  %291 = vmatpush.bf16.msra.mxu0 %v1434_v3  ;;  %v1422_v10 = vor.u32 %v1578_v6, %v1421_v5  ;;  %v1575_v13 = vld [vmem:[#allocation9 + $0x80] sm:$0xf0]  ;;  %v1505_v14 = vld [vmem:[#allocation10 + $0x78] sm:$0xf] }
  0x18   :  { %568 = vmatpush.bf16.msra.mxu3 %v1886_v7  ;;  %v1889_v11 = vor.u32 %v1602_v9, %v1517_v8  ;;  %v1599_v15 = vld [vmem:[#allocation10 + $0x80] sm:$0xf0]  ;;  %v1410_v16 = vor.u32 %v1575_v13, %v1409_v12  ;;  %v1397_v18 = vld [vmem:[#allocation9 + $0x60] sm:$0xf]  ;;  %v1572_v19 = vld [vmem:[#allocation9 + $0x68] sm:$0xf0] }
  0x19   :  { %v1892_v17 = vor.u32 %v1599_v15, %v1505_v14  ;;  %v1493_v20 = vld [vmem:[#allocation10 + $0x60] sm:$0xf]  ;;  %v1596_v21 = vld [vmem:[#allocation10 + $0x68] sm:$0xf0]  ;;  %v1398_v22 = vor.u32 %v1572_v19, %v1397_v18  ;;  %v1385_v24 = vld [vmem:[#allocation9 + $0x48] sm:$0xf] }
  0x1a   :  { %v1895_v23 = vor.u32 %v1596_v21, %v1493_v20  ;;  %v1569_v25 = vld [vmem:[#allocation9 + $0x50] sm:$0xf0]  ;;  %v1580_v26 = vld [vmem:[#allocation9 + $0xac] sm:$0xf]  ;;  %v1481_v27 = vld [vmem:[#allocation10 + $0x48] sm:$0xf] }
  0x1b   :  { %292 = vmatpush.bf16.msra.mxu0 %v1422_v10  ;;  %v1593_v28 = vld [vmem:[#allocation10 + $0x50] sm:$0xf0]  ;;  %v1435_v29 = vld [vmem:[#allocation9 + $0xb4] sm:$0xf0]  ;;  %v1423_v32 = vld [vmem:[#allocation9 + $0x9c] sm:$0xf0]  ;;  %v1386_v33 = vor.u32 %v1569_v25, %v1385_v24 }
  0x1c   :  { %569 = vmatpush.bf16.msra.mxu3 %v1889_v11  ;;  %v1438_v30 = vor.u32 %v1580_v26, %v1435_v29  ;;  %v1577_v31 = vld [vmem:[#allocation9 + $0x94] sm:$0xf]  ;;  %v1898_v34 = vor.u32 %v1593_v28, %v1481_v27  ;;  %v1373_v35 = vld [vmem:[#allocation9 + $0x30] sm:$0xf]  ;;  %v1566_v36 = vld [vmem:[#allocation9 + $0x38] sm:$0xf0] }
  0x1d   :  { %v1469_v37 = vld [vmem:[#allocation10 + $0x30] sm:$0xf]  ;;  %v1426_v38 = vor.u32 %v1577_v31, %v1423_v32  ;;  %v1590_v39 = vld [vmem:[#allocation10 + $0x38] sm:$0xf0]  ;;  %v1411_v41 = vld [vmem:[#allocation9 + $0x84] sm:$0xf0]  ;;  %v1374_v42 = vor.u32 %v1566_v36, %v1373_v35 }
  0x1e   :  { %320 = vmatpush.bf16.msra.mxu1 %v1438_v30  ;;  %v1574_v40 = vld [vmem:[#allocation9 + $0x7c] sm:$0xf]  ;;  %v1361_v43 = vld [vmem:[#allocation9 + $0x18] sm:$0xf]  ;;  %v1563_v44 = vld [vmem:[#allocation9 + $0x20] sm:$0xf0]  ;;  %v1901_v45 = vor.u32 %v1590_v39, %v1469_v37 }
  0x1f   :  { %293 = vmatpush.bf16.msra.mxu0 %v1410_v16  ;;  %v1457_v46 = vld [vmem:[#allocation10 + $0x18] sm:$0xf]  ;;  %v1587_v47 = vld [vmem:[#allocation10 + $0x20] sm:$0xf0]  ;;  %v1414_v48 = vor.u32 %v1574_v40, %v1411_v41  ;;  %v1399_v50 = vld [vmem:[#allocation9 + $0x6c] sm:$0xf0]  ;;  %v1362_v55 = vor.u32 %v1563_v44, %v1361_v43 }
  0x20   :  { %570 = vmatpush.bf16.msra.mxu3 %v1892_v17  ;;  %v1571_v49 = vld [vmem:[#allocation9 + $0x64] sm:$0xf]  ;;  %v1441_v51 = vld [vmem:[#allocation9 + $0xb0] sm:$0xf]  ;;  %v1582_v52 = vld [vmem:[#allocation9 + $0xb8] sm:$0xf0]  ;;  %v1904_v58 = vor.u32 %v1587_v47, %v1457_v46 }
  0x21   :  { %v1349_v53 = vld [vmem:[#allocation9] sm:$0xf]  ;;  %v1442_v54 = vor.u32 %v1582_v52, %v1441_v51  ;;  %v1560_v56 = vld [vmem:[#allocation9 + $0x8] sm:$0xf0]  ;;  %v1531_v61 = vld [vmem:[#allocation10 + $0xb4] sm:$0xf0]  ;;  %v1402_v62 = vor.u32 %v1571_v49, %v1399_v50 }
  0x22   :  { %321 = vmatpush.bf16.msra.mxu1 %v1426_v38  ;;  %v1445_v57 = vld [vmem:[#allocation10] sm:$0xf]  ;;  %v1584_v59 = vld [vmem:[#allocation10 + $0x8] sm:$0xf0]  ;;  %v1537_v63 = vld [vmem:[#allocation10 + $0xb0] sm:$0xf]  ;;  %v1350_v5 = vor.u32 %v1560_v56, %v1349_v53 }
  0x23   :  { %294 = vmatpush.bf16.msra.mxu0 %v1398_v22  ;;  %v1604_v60 = vld [vmem:[#allocation10 + $0xac] sm:$0xf]  ;;  %v1606_v0 = vld [vmem:[#allocation10 + $0xb8] sm:$0xf0]  ;;  %349 = vmatpush.bf16.msra.mxu2 %v1442_v54  ;;  %v1429_v1 = vld [vmem:[#allocation9 + $0x98] sm:$0xf]  ;;  %v1907_v8 = vor.u32 %v1584_v59, %v1445_v57 }
  0x24   :  { %571 = vmatpush.bf16.msra.mxu3 %v1895_v23  ;;  %v1568_v2 = vld [vmem:[#allocation9 + $0x4c] sm:$0xf]  ;;  %v1387_v3 = vld [vmem:[#allocation9 + $0x54] sm:$0xf0]  ;;  %v1579_v4 = vld [vmem:[#allocation9 + $0xa0] sm:$0xf0]  ;;  %v1913_v12 = vor.u32 %v1606_v0, %v1537_v63  ;;  %v1915_v15 = vor.u32 %v1604_v60, %v1531_v61 }
  0x25   :  { %v1430_v6 = vor.u32 %v1579_v4, %v1429_v1  ;;  %v1909_v9 = vld [vmem:[#allocation4] sm:$0xff]  ;;  %v1601_v13 = vld [vmem:[#allocation10 + $0x94] sm:$0xf]  ;;  %v1603_v16 = vld [vmem:[#allocation10 + $0xa0] sm:$0xf0]  ;;  %v1390_v18 = vor.u32 %v1568_v2, %v1387_v3  ;;  %s1316_s25 = sshll.u32 %s2281_s6, 4  ;;  %s1317_s25 = int_to_ptr.hbm [resolvable:$true] %s1316_s25 }
  0x26   :  { %322 = vmatpush.bf16.msra.mxu1 %v1414_v48  ;;  %v1911_v10 = vld [vmem:[#allocation7] sm:$0xff]  ;;  %v1417_v19 = vld [vmem:[#allocation9 + $0x80] sm:$0xf]  ;;  %v1576_v20 = vld [vmem:[#allocation9 + $0x88] sm:$0xf0]  ;;  %s1837_s26 = smov 128  }
  0x27   :  { %295 = vmatpush.bf16.msra.mxu0 %v1386_v33  ;;  %v1525_v14 = vld [vmem:[#allocation10 + $0x98] sm:$0xf]  ;;  %350 = vmatpush.bf16.msra.mxu2 %v1430_v6  ;;  %v1519_v21 = vld [vmem:[#allocation10 + $0x9c] sm:$0xf0]  ;;  %v1565_v22 = vld [vmem:[#allocation9 + $0x34] sm:$0xf]  ;;  %v1418_v25 = vor.u32 %v1576_v20, %v1417_v19  ;;  %v1919_v26 = vpack.c.bf16 %v1911_v10, %v1911_v10 }
  0x28   :  { %572 = vmatpush.bf16.msra.mxu3 %v1898_v34  ;;  %v1375_v24 = vld [vmem:[#allocation9 + $0x3c] sm:$0xf0]  ;;  %v1598_v27 = vld [vmem:[#allocation10 + $0x7c] sm:$0xf]  ;;  %v1923_v28 = vor.u32 %v1603_v16, %v1525_v14  ;;  %v1926_v30 = vor.u32 %v1601_v13, %v1519_v21  ;;  %v1600_v31 = vld [vmem:[#allocation10 + $0x88] sm:$0xf0] }
  0x29   :  { %v1513_v29 = vld [vmem:[#allocation10 + $0x80] sm:$0xf]  ;;  %v1378_v32 = vor.u32 %v1565_v22, %v1375_v24  ;;  %v1405_v33 = vld [vmem:[#allocation9 + $0x68] sm:$0xf]  ;;  %v1573_v35 = vld [vmem:[#allocation9 + $0x70] sm:$0xf0] }
  0x2a   :  { %323 = vmatpush.bf16.msra.mxu1 %v1402_v62  ;;  %v1507_v36 = vld [vmem:[#allocation10 + $0x84] sm:$0xf0]  ;;  %v1562_v37 = vld [vmem:[#allocation9 + $0x1c] sm:$0xf]  ;;  %v1406_v39 = vor.u32 %v1573_v35, %v1405_v33  ;;  %v1393_v40 = vld [vmem:[#allocation9 + $0x50] sm:$0xf] }
  0x2b   :  { %296 = vmatpush.bf16.msra.mxu0 %v1374_v42  ;;  %v1363_v38 = vld [vmem:[#allocation9 + $0x24] sm:$0xf0]  ;;  %351 = vmatpush.bf16.msra.mxu2 %v1418_v25  ;;  %v1570_v41 = vld [vmem:[#allocation9 + $0x58] sm:$0xf0]  ;;  %v1931_v42 = vor.u32 %v1600_v31, %v1513_v29  ;;  %v1934_v43 = vor.u32 %v1598_v27, %v1507_v36  ;;  %v1595_v44 = vld [vmem:[#allocation10 + $0x64] sm:$0xf] }
  0x2c   :  { %573 = vmatpush.bf16.msra.mxu3 %v1901_v45  ;;  %v1501_v46 = vld [vmem:[#allocation10 + $0x68] sm:$0xf]  ;;  %v1597_v47 = vld [vmem:[#allocation10 + $0x70] sm:$0xf0]  ;;  %v1366_v48 = vor.u32 %v1562_v37, %v1363_v38  ;;  %v1495_v49 = vld [vmem:[#allocation10 + $0x6c] sm:$0xf0]  ;;  %v1394_v52 = vor.u32 %v1570_v41, %v1393_v40 }
  0x2d   :  { %v1559_v50 = vld [vmem:[#allocation9 + $0x4] sm:$0xf]  ;;  %v1351_v51 = vld [vmem:[#allocation9 + $0xc] sm:$0xf0]  ;;  %v1381_v53 = vld [vmem:[#allocation9 + $0x38] sm:$0xf]  ;;  %v1940_v56 = vor.u32 %v1595_v44, %v1495_v49 }
  0x2e   :  { %324 = vmatpush.bf16.msra.mxu1 %v1390_v18  ;;  %v1567_v54 = vld [vmem:[#allocation9 + $0x40] sm:$0xf0]  ;;  %v1354_v57 = vor.u32 %v1559_v50, %v1351_v51  ;;  %v1489_v59 = vld [vmem:[#allocation10 + $0x50] sm:$0xf]  ;;  %v1594_v60 = vld [vmem:[#allocation10 + $0x58] sm:$0xf0] }
  0x2f   :  { %297 = vmatpush.bf16.msra.mxu0 %v1362_v55  ;;  %352 = vmatpush.bf16.msra.mxu2 %v1406_v39  ;;  %v1937_v55 = vor.u32 %v1597_v47, %v1501_v46  ;;  %v1592_v61 = vld [vmem:[#allocation10 + $0x4c] sm:$0xf]  ;;  %v1483_v62 = vld [vmem:[#allocation10 + $0x54] sm:$0xf0]  ;;  %v1382_v63 = vor.u32 %v1567_v54, %v1381_v53  ;;  %v1369_v0 = vld [vmem:[#allocation9 + $0x20] sm:$0xf]  ;;  %v1943_v2 = vor.u32 %v1594_v60, %v1489_v59 }
  0x30   :  { %574 = vmatpush.bf16.msra.mxu3 %v1904_v58  ;;  %v1564_v1 = vld [vmem:[#allocation9 + $0x28] sm:$0xf0]  ;;  %v1946_v3 = vor.u32 %v1592_v61, %v1483_v62  ;;  %v1477_v4 = vld [vmem:[#allocation10 + $0x38] sm:$0xf]  ;;  %v1556_v6 = vld [vmem:[#allocation4 + $0x8] sm:$0xff]  ;;  %s1838_s27 = smov 8  }
  0x31   :  { %v1589_v13 = vld [vmem:[#allocation10 + $0x34] sm:$0xf]  ;;  %v1471_v14 = vld [vmem:[#allocation10 + $0x3c] sm:$0xf0]  ;;  %v1370_v16 = vor.u32 %v1564_v1, %v1369_v0  ;;  %v1586_v20 = vld [vmem:[#allocation10 + $0x1c] sm:$0xf] }
  0x32   :  { %325 = vmatpush.bf16.msra.mxu1 %v1378_v32  ;;  %v1954_v19 = vor.u32 %v1589_v13, %v1471_v14  ;;  %v1357_v21 = vld [vmem:[#allocation9 + $0x8] sm:$0xf]  ;;  %v1561_v22 = vld [vmem:[#allocation9 + $0x10] sm:$0xf0]  ;;  %v1465_v25 = vld [vmem:[#allocation10 + $0x20] sm:$0xf] }
  0x33   :  { %298 = vmatpush.bf16.msra.mxu0 %v1350_v5  ;;  %353 = vmatpush.bf16.msra.mxu2 %v1394_v52  ;;  %v1591_v5 = vld [vmem:[#allocation10 + $0x40] sm:$0xf0]  ;;  %v1459_v24 = vld [vmem:[#allocation10 + $0x24] sm:$0xf0]  ;;  %v1588_v27 = vld [vmem:[#allocation10 + $0x28] sm:$0xf0]  ;;  %v1358_v29 = vor.u32 %v1561_v22, %v1357_v21 }
  0x34   :  { %575 = vmatpush.bf16.msra.mxu3 %v1907_v8  ;;  %v1951_v18 = vor.u32 %v1591_v5, %v1477_v4  ;;  %v1958_v31 = vor.u32 %v1588_v27, %v1465_v25  ;;  %v1961_v32 = vor.u32 %v1586_v20, %v1459_v24  ;;  %v1453_v33 = vld [vmem:[#allocation10 + $0x8] sm:$0xf]  ;;  %v1585_v35 = vld [vmem:[#allocation10 + $0x10] sm:$0xf0]  ;;  %v1583_v36 = vld [vmem:[#allocation10 + $0x4] sm:$0xf] }
  0x35   :  { %v1447_v37 = vld [vmem:[#allocation10 + $0xc] sm:$0xf0]  ;;  %v1966_v38 = vor.u32 %v1585_v35, %v1453_v33  ;;  %v1557_v40 = vld [vmem:[#allocation4 + $0x10] sm:$0xff]  ;;  %v131_v41 = vld [vmem:[%s2279_s4] sm:$0x7] }
  0x36   :  { %299 = vmatmul.bf16.vlgmr.msra.gmra.mxu0 %v1909_v9  ;;  %326 = vmatpush.bf16.msra.mxu1 %v1366_v48  ;;  %v1969_v39 = vor.u32 %v1583_v36, %v1447_v37  ;;  %v133_v44 = vperm.slane %v131_v41, 0  ;;  %v2045_v60 = vperm.slane %v131_v41, 1 }
  0x37   :  { %594 = vmatpush.bf16.msrb.mxu0 %v1913_v12  ;;  %576 = vmatmul.bf16.vlgmr.msra.gmra.mxu3 %v1919_v26 }
  0x38   :  { %581 = vmatpush.bf16.msrb.mxu3 %v1915_v15  ;;  %354 = vmatpush.bf16.msra.mxu2 %v1382_v63 }
  0x3a   :  { %327 = vmatpush.bf16.msra.mxu1 %v1354_v57 }
  0x3b   :  { %595 = vmatpush.bf16.msrb.mxu0 %v1923_v28 }
  0x3c   :  { %582 = vmatpush.bf16.msrb.mxu3 %v1926_v30  ;;  %355 = vmatpush.bf16.msra.mxu2 %v1370_v16 }
  0x3d   :  { %328 = vmatmul.bf16.vlgmr.msra.gmra.mxu1 %v1909_v9 }
  0x3e   :  { %663 = vmatpush.bf16.msrb.mxu1 %v1886_v7 }
  0x3f   :  { %596 = vmatpush.bf16.msrb.mxu0 %v1931_v42 }
  0x40   :  { %583 = vmatpush.bf16.msrb.mxu3 %v1934_v43  ;;  %356 = vmatpush.bf16.msra.mxu2 %v1358_v29 }
  0x42   :  { %664 = vmatpush.bf16.msrb.mxu1 %v1889_v11 }
  0x43   :  { %597 = vmatpush.bf16.msrb.mxu0 %v1937_v55  ;;  %357 = vmatmul.bf16.vlgmr.msra.gmra.mxu2 %v1909_v9  ;;  %v1558_v9 = vld [vmem:[#allocation4 + $0x18] sm:$0xff] }
  0x44   :  { %584 = vmatpush.bf16.msrb.mxu3 %v1940_v56  ;;  %676 = vmatpush.bf16.msrb.mxu2 %v1915_v15 }
  0x46   :  { %304 = vmatmul.bf16.gmra.mxu0 %v1556_v6  ;;  %665 = vmatpush.bf16.msrb.mxu1 %v1892_v17 }
  0x47   :  { %598 = vmatpush.bf16.msrb.mxu0 %v1943_v2 }
  0x48   :  { %585 = vmatpush.bf16.msrb.mxu3 %v1946_v3  ;;  %677 = vmatpush.bf16.msrb.mxu2 %v1926_v30 }
  0x4a   :  { %666 = vmatpush.bf16.msrb.mxu1 %v1895_v23 }
  0x4b   :  { %599 = vmatpush.bf16.msrb.mxu0 %v1951_v18 }
  0x4c   :  { %586 = vmatpush.bf16.msrb.mxu3 %v1954_v19  ;;  %678 = vmatpush.bf16.msrb.mxu2 %v1934_v43 }
  0x4d   :  { %333 = vmatmul.bf16.gmra.mxu1 %v1556_v6 }
  0x4e   :  { %667 = vmatpush.bf16.msrb.mxu1 %v1898_v34 }
  0x4f   :  { %600 = vmatpush.bf16.msrb.mxu0 %v1958_v31 }
  0x50   :  { %587 = vmatpush.bf16.msrb.mxu3 %v1961_v32  ;;  %679 = vmatpush.bf16.msrb.mxu2 %v1940_v56 }
  0x52   :  { %668 = vmatpush.bf16.msrb.mxu1 %v1901_v45 }
  0x53   :  { %601 = vmatpush.bf16.msrb.mxu0 %v1966_v38  ;;  %362 = vmatmul.bf16.gmra.mxu2 %v1556_v6 }
  0x54   :  { %588 = vmatpush.bf16.msrb.mxu3 %v1969_v39  ;;  %680 = vmatpush.bf16.msrb.mxu2 %v1946_v3 }
  0x56   :  { %309 = vmatmul.bf16.gmra.mxu0 %v1557_v40  ;;  %669 = vmatpush.bf16.msrb.mxu1 %v1904_v58 }
  0x57   :  { %756 = vmatpush.bf16.msra.mxu0 %v1886_v7  ;;  %589 = vmatmul.bf16.vlgmr.msrb.gmra.mxu3 %v1919_v26 }
  0x58   :  { %689 = vmatpush.bf16.msra.mxu3 %v1913_v12  ;;  %681 = vmatpush.bf16.msrb.mxu2 %v1954_v19 }
  0x5a   :  { %670 = vmatpush.bf16.msrb.mxu1 %v1907_v8 }
  0x5b   :  { %757 = vmatpush.bf16.msra.mxu0 %v1889_v11 }
  0x5c   :  { %690 = vmatpush.bf16.msra.mxu3 %v1923_v28  ;;  %682 = vmatpush.bf16.msrb.mxu2 %v1961_v32 }
  0x5d   :  { %338 = vmatmul.bf16.gmra.mxu1 %v1557_v40 }
  0x5e   :  { %769 = vmatpush.bf16.msra.mxu1 %v1915_v15 }
  0x5f   :  { %758 = vmatpush.bf16.msra.mxu0 %v1892_v17 }
  0x60   :  { %691 = vmatpush.bf16.msra.mxu3 %v1931_v42  ;;  %683 = vmatpush.bf16.msrb.mxu2 %v1969_v39 }
  0x62   :  { %770 = vmatpush.bf16.msra.mxu1 %v1926_v30 }
  0x63   :  { %759 = vmatpush.bf16.msra.mxu0 %v1895_v23  ;;  %367 = vmatmul.bf16.gmra.mxu2 %v1557_v40 }
  0x64   :  { %692 = vmatpush.bf16.msra.mxu3 %v1937_v55  ;;  %782 = vmatpush.bf16.msra.mxu2 %v1913_v12 }
  0x66   :  { %314 = vmatmul.bf16.gmra.mxu0 %v1558_v9  ;;  %771 = vmatpush.bf16.msra.mxu1 %v1934_v43 }
  0x67   :  { %760 = vmatpush.bf16.msra.mxu0 %v1898_v34 }
  0x68   :  { %693 = vmatpush.bf16.msra.mxu3 %v1943_v2  ;;  %783 = vmatpush.bf16.msra.mxu2 %v1923_v28 }
  0x6a   :  { %772 = vmatpush.bf16.msra.mxu1 %v1940_v56 }
  0x6b   :  { %761 = vmatpush.bf16.msra.mxu0 %v1901_v45 }
  0x6c   :  { %694 = vmatpush.bf16.msra.mxu3 %v1951_v18  ;;  %784 = vmatpush.bf16.msra.mxu2 %v1931_v42 }
  0x6d   :  { %343 = vmatmul.bf16.gmra.mxu1 %v1558_v9 }
  0x6e   :  { %773 = vmatpush.bf16.msra.mxu1 %v1946_v3 }
  0x6f   :  { %762 = vmatpush.bf16.msra.mxu0 %v1904_v58 }
  0x70   :  { %695 = vmatpush.bf16.msra.mxu3 %v1958_v31  ;;  %785 = vmatpush.bf16.msra.mxu2 %v1937_v55 }
  0x72   :  { %774 = vmatpush.bf16.msra.mxu1 %v1954_v19 }
  0x73   :  { %763 = vmatpush.bf16.msra.mxu0 %v1907_v8  ;;  %372 = vmatmul.bf16.gmra.mxu2 %v1558_v9 }
  0x74   :  { %696 = vmatpush.bf16.msra.mxu3 %v1966_v38  ;;  %786 = vmatpush.bf16.msra.mxu2 %v1943_v2 }
  0x76   :  { %602 = vmatmul.bf16.vlgmr.msrb.gmra.mxu0 %v1919_v26  ;;  %775 = vmatpush.bf16.msra.mxu1 %v1961_v32 }
  0x77   :  { %862 = vmatpush.bf16.msrb.mxu0 %v1915_v15 }
  0x78   :  { %849 = vmatpush.bf16.msrb.mxu3 %v1886_v7  ;;  %787 = vmatpush.bf16.msra.mxu2 %v1951_v18 }
  0x7a   :  { %776 = vmatpush.bf16.msra.mxu1 %v1969_v39 }
  0x7b   :  { %863 = vmatpush.bf16.msrb.mxu0 %v1926_v30 }
  0x7c   :  { %850 = vmatpush.bf16.msrb.mxu3 %v1889_v11  ;;  %788 = vmatpush.bf16.msra.mxu2 %v1958_v31 }
  0x7f   :  { %864 = vmatpush.bf16.msrb.mxu0 %v1934_v43 }
  0x80   :  { %851 = vmatpush.bf16.msrb.mxu3 %v1892_v17  ;;  %789 = vmatpush.bf16.msra.mxu2 %v1966_v38 }
  0x83   :  { %865 = vmatpush.bf16.msrb.mxu0 %v1940_v56 }
  0x84   :  { %852 = vmatpush.bf16.msrb.mxu3 %v1895_v23 }
  0x87   :  { %866 = vmatpush.bf16.msrb.mxu0 %v1946_v3 }
  0x88   :  { %853 = vmatpush.bf16.msrb.mxu3 %v1898_v34 }
  0x8b   :  { %867 = vmatpush.bf16.msrb.mxu0 %v1954_v19 }
  0x8c   :  { %854 = vmatpush.bf16.msrb.mxu3 %v1901_v45 }
  0x8f   :  { %868 = vmatpush.bf16.msrb.mxu0 %v1961_v32 }
  0x90   :  { %855 = vmatpush.bf16.msrb.mxu3 %v1904_v58 }
  0x93   :  { %869 = vmatpush.bf16.msrb.mxu0 %v1969_v39 }
  0x94   :  { %856 = vmatpush.bf16.msrb.mxu3 %v1907_v8 }
  0xb3   :  { %v300_v26 = vpop.f32.mrf.mxu0 }
  0xb4   :  { %v301_v49 = vadd.f32 %v300_v26, %v133_v44 }
  0xba   :  { %v577_v46 = vpop.f32.mrf.mxu3  ;;  %v329_v61 = vpop.f32.mrf.mxu1 }
  0xbb   :  { %v302_v47 = vpop.f32.mrf.mxu0  ;;  %v607_v52 = vadd.f32 %v577_v46, %v301_v49  ;;  %v330_v1 = vadd.f32 %v329_v61, %v2045_v60 }
  0xbc   :  { %v2039_v48 = vadd.f32 %v302_v47, %v133_v44  ;;  %v2056_v47 = vperm.slane %v131_v41, 2 }
  0xbd   :  { %v1539_v54 = vmul.f32 -1.442695, %v607_v52 }
  0xbf   :  { %1619 = vpow2.f32 %v1539_v54 }
  0xc2   :  { %v579_v50 = vpop.f32.mrf.mxu3 }
  0xc3   :  { %v305_v51 = vpop.f32.mrf.mxu0  ;;  %v2061_v50 = vld [vmem:[%s2280_s5] ss:$0 sm:$0xff] }
  0xc4   :  { %v2041_v53 = vadd.f32 %v305_v51, %v133_v44 }
  0xc5   :  { %v1620_v62 = vpop.eup %1619 }
  0xc6   :  { %v611_v4 = vadd.f32 1.0, %v1620_v62  ;;  %v358_v54 = vpop.f32.mrf.mxu2 }
  0xc7   :  { %v359_v61 = vadd.f32 %v358_v54, %v2056_v47 }
  0xc8   :  { %1621 = vrcp.f32 %v611_v4  ;;  %v623_v46 = vand.u32 2147483648, %v611_v4  ;;  %vm617_vm1 = vweird.f32 %v611_v4  ;;  %v621_v49 = vand.u32 2147483647, %v611_v4 }
  0xca   :  { %vm622_vm3 = vcmp.eq.f32.partialorder %v621_v49, 8.507059e+37 }
  0xcb   :  { %v307_v57 = vpop.f32.mrf.mxu0 }
  0xcc   :  { %v2043_v59 = vadd.f32 %v307_v57, %v133_v44 }
  0xce   :  { %v1622_v20 = vpop.eup %1621 }
  0xcf   :  { %v613_v24 = vmul.f32 %v1622_v20, %v611_v4  ;;  %vm618_vm0 = vweird.f32 %v1622_v20 }
  0xd0   :  { %vm619_vm2 = vmor %vm617_vm1, %vm618_vm0 }
  0xd1   :  { %v614_v33 = vsub.f32 1.0, %v613_v24 }
  0xd3   :  { %v310_v63 = vpop.f32.mrf.mxu0  ;;  %v615_v35 = vmul.f32 %v1622_v20, %v614_v33 }
  0xd4   :  { %v2047_v0 = vadd.f32 %v310_v63, %v133_v44 }
  0xd5   :  { %v616_v9 = vadd.f32 %v1622_v20, %v615_v35 }
  0xd7   :  { %v620_v51 = vsel %vm619_vm2, %v1622_v20, %v616_v9 }
  0xda   :  { %v590_v5 = vpop.f32.mrf.mxu3 }
  0xdb   :  { %v627_v6 = vadd.f32 %v590_v5, %v330_v1  ;;  %v312_v14 = vpop.f32.mrf.mxu0 }
  0xdc   :  { %v2050_v16 = vadd.f32 %v312_v14, %v133_v44 }
  0xdd   :  { %v1540_v13 = vmul.f32 -1.442695, %v627_v6 }
  0xdf   :  { %1623 = vpow2.f32 %v1540_v13 }
  0xe2   :  { %v592_v21 = vpop.f32.mrf.mxu3 }
  0xe3   :  { %v315_v27 = vpop.f32.mrf.mxu0 }
  0xe4   :  { %v2052_v29 = vadd.f32 %v315_v27, %v133_v44 }
  0xe5   :  { %v1624_v22 = vpop.eup %1623 }
  0xe6   :  { %v631_v25 = vadd.f32 1.0, %v1624_v22 }
  0xe8   :  { %1625 = vrcp.f32 %v631_v25  ;;  %vm637_vm4 = vweird.f32 %v631_v25  ;;  %v643_v5 = vand.u32 2147483648, %v631_v25  ;;  %v641_v14 = vand.u32 2147483647, %v631_v25 }
  0xea   :  { %v644_v20 = vor.u32 1.1754944e-38, %v643_v5  ;;  %vm642_vm7 = vcmp.eq.f32.partialorder %v641_v14, 8.507059e+37 }
  0xeb   :  { %v317_v36 = vpop.f32.mrf.mxu0 }
  0xec   :  { %v2054_v40 = vadd.f32 %v317_v36, %v133_v44  ;;  %v624_v44 = vor.u32 1.1754944e-38, %v623_v46 }
  0xee   :  { %v1626_v37 = vpop.eup %1625  ;;  %2282 = vst [vmem:[#allocation17_spill] sm:$0xff] %v2054_v40  ;;  %v625_v41 = vsel %vm622_vm3, %v624_v44, %v620_v51 }
  0xef   :  { %v633_v26 = vmul.f32 %v1626_v37, %v631_v25  ;;  %vm638_vm5 = vweird.f32 %v1626_v37  ;;  %v360_v25 = vpop.f32.mrf.mxu2 }
  0xf0   :  { %vm639_vm6 = vmor %vm637_vm4, %vm638_vm5 }
  0xf1   :  { %v634_v52 = vsub.f32 1.0, %v633_v26 }
  0xf3   :  { %v603_v57 = vpop.f32.mrf.mxu0  ;;  %v635_v1 = vmul.f32 %v1626_v37, %v634_v52 }
  0xf4   :  { %v650_v62 = vadd.f32 %v2061_v50, %v603_v57 }
  0xf5   :  { %v636_v13 = vadd.f32 %v1626_v37, %v635_v1 }
  0xf6   :  { %v651_v63 = vmul.f32 %v650_v62, %v625_v41 }
  0xf7   :  { %v640_v21 = vsel %vm639_vm6, %v1626_v37, %v636_v13  ;;  %v2097_v9 = vpop.f32.mrf.mxu2 }
  0xf8   :  { %v652_v4 = vadd.f32 %v651_v63, %v359_v61  ;;  %v645_v27 = vsel %vm642_vm7, %v644_v20, %v640_v21 }
  0xfa   :  { %1627 = vtanh.f32 %v652_v4 }
  0xfb   :  { %v605_v6 = vpop.f32.mrf.mxu0 }
  0xff   :  { %v2101_v46 = vpop.f32.mrf.mxu2 }
 0x100   :  { %v1628_v22 = vpop.eup %1627 }
 0x101   :  { %v654_v24 = vsub.f32 %v1911_v10, %v1628_v22  ;;  %v331_v10 = vpop.f32.mrf.mxu1 }
 0x102   :  { %v332_v4 = vadd.f32 %v331_v10, %v2045_v60 }
 0x103   :  { %v655_v33 = vmul.f32 %v654_v24, %v645_v27 }
 0x105   :  { %v2066_v35 = vadd.f32 %v1628_v22, %v655_v33 }
 0x107   :  { %657 = vst [vmem:[#allocation12] sm:$0xff] %v2066_v35  ;;  %v662_v36 = vpack.c.bf16 %v2066_v35, %v2066_v35  ;;  %v2105_v51 = vpop.f32.mrf.mxu2 }
 0x109   :  { %671 = vmatmul.bf16.vlgmr.msrb.gmra.mxu1 %v662_v36  ;;  %684 = vmatmul.bf16.vlgmr.msrb.gmra.mxu2 %v662_v36  ;;  %v2095_v37 = vpop.f32.mrf.mxu1 }
 0x10a   :  { %697 = vmatmul.bf16.vlgmr.msra.gmra.mxu3 %v662_v36  ;;  %875 = vmatpush.bf16.msrb.mxu1 %v1913_v12 }
 0x10b   :  { %942 = vmatpush.bf16.msrb.mxu2 %v1886_v7  ;;  %955 = vmatpush.bf16.msra.mxu3 %v1915_v15 }
 0x10e   :  { %876 = vmatpush.bf16.msrb.mxu1 %v1923_v28 }
 0x10f   :  { %943 = vmatpush.bf16.msrb.mxu2 %v1889_v11  ;;  %956 = vmatpush.bf16.msra.mxu3 %v1926_v30  ;;  %v2109_v54 = vpop.f32.mrf.mxu2 }
 0x111   :  { %v2099_v26 = vpop.f32.mrf.mxu1 }
 0x112   :  { %877 = vmatpush.bf16.msrb.mxu1 %v1931_v42 }
 0x113   :  { %944 = vmatpush.bf16.msrb.mxu2 %v1892_v17  ;;  %957 = vmatpush.bf16.msra.mxu3 %v1934_v43 }
 0x116   :  { %878 = vmatpush.bf16.msrb.mxu1 %v1937_v55 }
 0x117   :  { %945 = vmatpush.bf16.msrb.mxu2 %v1895_v23  ;;  %958 = vmatpush.bf16.msra.mxu3 %v1940_v56  ;;  %v2113_v44 = vpop.f32.mrf.mxu2 }
 0x118   :  { %2283 = vst [vmem:[#allocation18_spill] sm:$0xff] %v2113_v44 }
 0x119   :  { %v2103_v49 = vpop.f32.mrf.mxu1 }
 0x11a   :  { %879 = vmatpush.bf16.msrb.mxu1 %v1943_v2 }
 0x11b   :  { %946 = vmatpush.bf16.msrb.mxu2 %v1898_v34  ;;  %959 = vmatpush.bf16.msra.mxu3 %v1946_v3 }
 0x11e   :  { %880 = vmatpush.bf16.msrb.mxu1 %v1951_v18 }
 0x11f   :  { %947 = vmatpush.bf16.msrb.mxu2 %v1901_v45  ;;  %960 = vmatpush.bf16.msra.mxu3 %v1954_v19  ;;  %v2117_v62 = vpop.f32.mrf.mxu2 }
 0x120   :  { %2285 = vst [vmem:[#allocation20_spill] sm:$0xff] %v2117_v62 }
 0x121   :  { %v2107_v52 = vpop.f32.mrf.mxu1 }
 0x122   :  { %881 = vmatpush.bf16.msrb.mxu1 %v1958_v31 }
 0x123   :  { %948 = vmatpush.bf16.msrb.mxu2 %v1904_v58  ;;  %961 = vmatpush.bf16.msra.mxu3 %v1961_v32 }
 0x126   :  { %882 = vmatpush.bf16.msrb.mxu1 %v1966_v38 }
 0x127   :  { %949 = vmatpush.bf16.msrb.mxu2 %v1907_v8  ;;  %962 = vmatpush.bf16.msra.mxu3 %v1969_v39 }
 0x129   :  { %v2111_v57 = vpop.f32.mrf.mxu1 }
 0x131   :  { %v2115_v61 = vpop.f32.mrf.mxu1 }
 0x132   :  { %2284 = vst [vmem:[#allocation19_spill] sm:$0xff] %v2115_v61 }
 0x186   :  { %v672_v41 = vpop.f32.mrf.mxu1 }
 0x187   :  { %v702_v63 = vadd.f32 %v672_v41, %v2039_v48 }
 0x189   :  { %v1541_v1 = vmul.f32 -1.442695, %v702_v63 }
 0x18b   :  { %1629 = vpow2.f32 %v1541_v1 }
 0x18c   :  { %v685_v5 = vpop.f32.mrf.mxu2 }
 0x18d   :  { %v722_v6 = vadd.f32 %v685_v5, %v332_v4  ;;  %v698_v13 = vpop.f32.mrf.mxu3 }
 0x18e   :  { %v674_v14 = vpop.f32.mrf.mxu1 }
 0x18f   :  { %v1542_v20 = vmul.f32 -1.442695, %v722_v6 }
 0x191   :  { %v1630_v21 = vpop.eup %1629  ;;  %1631 = vpow2.f32 %v1542_v20 }
 0x192   :  { %v706_v22 = vadd.f32 1.0, %v1630_v21 }
 0x194   :  { %1633 = vrcp.f32 %v706_v22  ;;  %v687_v24 = vpop.f32.mrf.mxu2  ;;  %v718_v63 = vand.u32 2147483648, %v706_v22  ;;  %v716_v1 = vand.u32 2147483647, %v706_v22  ;;  %vm712_vm9 = vweird.f32 %v706_v22 }
 0x195   :  { %v700_v27 = vpop.f32.mrf.mxu3  ;;  %v742_v24 = vadd.f32 %v2061_v50, %v698_v13 }
 0x196   :  { %v719_v6 = vor.u32 1.1754944e-38, %v718_v63  ;;  %vm717_vm11 = vcmp.eq.f32.partialorder %v716_v1, 8.507059e+37 }
 0x197   :  { %v1632_v33 = vpop.eup %1631 }
 0x198   :  { %v726_v36 = vadd.f32 1.0, %v1632_v33  ;;  %v361_v33 = vadd.f32 %v360_v25, %v2056_v47 }
 0x19a   :  { %v1634_v62 = vpop.eup %1633  ;;  %1635 = vrcp.f32 %v726_v36  ;;  %v738_v44 = vand.u32 2147483648, %v726_v36  ;;  %vm732_vm13 = vweird.f32 %v726_v36 }
 0x19b   :  { %v708_v48 = vmul.f32 %v1634_v62, %v706_v22  ;;  %vm713_vm8 = vweird.f32 %v1634_v62 }
 0x19c   :  { %vm714_vm10 = vmor %vm712_vm9, %vm713_vm8 }
 0x19d   :  { %v709_v41 = vsub.f32 1.0, %v708_v48 }
 0x19f   :  { %v710_v10 = vmul.f32 %v1634_v62, %v709_v41 }
 0x1a0   :  { %v1636_v4 = vpop.eup %1635 }
 0x1a1   :  { %v728_v5 = vmul.f32 %v1636_v4, %v726_v36  ;;  %v711_v14 = vadd.f32 %v1634_v62, %v710_v10  ;;  %vm733_vm12 = vweird.f32 %v1636_v4  ;;  %v736_v10 = vand.u32 2147483647, %v726_v36 }
 0x1a2   :  { %vm734_vm14 = vmor %vm732_vm13, %vm733_vm12 }
 0x1a3   :  { %v729_v20 = vsub.f32 1.0, %v728_v5  ;;  %v715_v21 = vsel %vm714_vm10, %v1634_v62, %v711_v14  ;;  %v739_v5 = vor.u32 1.1754944e-38, %v738_v44  ;;  %vm737_vm15 = vcmp.eq.f32.partialorder %v736_v10, 8.507059e+37 }
 0x1a4   :  { %v720_v27 = vsel %vm717_vm11, %v719_v6, %v715_v21 }
 0x1a5   :  { %v743_v40 = vmul.f32 %v742_v24, %v720_v27  ;;  %v730_v48 = vmul.f32 %v1636_v4, %v729_v20 }
 0x1a7   :  { %v744_v61 = vadd.f32 %v743_v40, %v361_v33  ;;  %v731_v41 = vadd.f32 %v1636_v4, %v730_v48 }
 0x1a9   :  { %1637 = vtanh.f32 %v744_v61  ;;  %v735_v22 = vsel %vm734_vm14, %v1636_v4, %v731_v41 }
 0x1aa   :  { %v740_v13 = vsel %vm737_vm15, %v739_v5, %v735_v22 }
 0x1af   :  { %v1638_v63 = vpop.eup %1637 }
 0x1b0   :  { %v746_v62 = vsub.f32 %v2066_v35, %v1638_v63  ;;  %v335_v35 = vadd.f32 %v2095_v37, %v2045_v60 }
 0x1b2   :  { %v747_v1 = vmul.f32 %v746_v62, %v740_v13 }
 0x1b4   :  { %v2124_v14 = vadd.f32 %v1638_v63, %v747_v1 }
 0x1b6   :  { %750 = vst [vmem:[#allocation12 + $0x8] sm:$0xff] %v2124_v14  ;;  %v755_v40 = vpack.c.bf16 %v2124_v14, %v2124_v14 }
 0x1b8   :  { %764 = vmatmul.bf16.vlgmr.msra.gmra.mxu0 %v755_v40  ;;  %777 = vmatmul.bf16.vlgmr.msra.gmra.mxu1 %v755_v40 }
 0x1b9   :  { %790 = vmatmul.bf16.vlgmr.msra.gmra.mxu2 %v755_v40  ;;  %968 = vmatpush.bf16.msra.mxu0 %v1913_v12 }
 0x1ba   :  { %1035 = vmatpush.bf16.msra.mxu1 %v1886_v7  ;;  %1048 = vmatpush.bf16.msra.mxu2 %v1915_v15 }
 0x1bd   :  { %969 = vmatpush.bf16.msra.mxu0 %v1923_v28 }
 0x1be   :  { %1036 = vmatpush.bf16.msra.mxu1 %v1889_v11  ;;  %1049 = vmatpush.bf16.msra.mxu2 %v1926_v30 }
 0x1c1   :  { %970 = vmatpush.bf16.msra.mxu0 %v1931_v42 }
 0x1c2   :  { %1037 = vmatpush.bf16.msra.mxu1 %v1892_v17  ;;  %1050 = vmatpush.bf16.msra.mxu2 %v1934_v43 }
 0x1c5   :  { %971 = vmatpush.bf16.msra.mxu0 %v1937_v55 }
 0x1c6   :  { %1038 = vmatpush.bf16.msra.mxu1 %v1895_v23  ;;  %1051 = vmatpush.bf16.msra.mxu2 %v1940_v56 }
 0x1c9   :  { %972 = vmatpush.bf16.msra.mxu0 %v1943_v2 }
 0x1ca   :  { %1039 = vmatpush.bf16.msra.mxu1 %v1898_v34  ;;  %1052 = vmatpush.bf16.msra.mxu2 %v1946_v3 }
 0x1cd   :  { %973 = vmatpush.bf16.msra.mxu0 %v1951_v18 }
 0x1ce   :  { %1040 = vmatpush.bf16.msra.mxu1 %v1901_v45  ;;  %1053 = vmatpush.bf16.msra.mxu2 %v1954_v19 }
 0x1d1   :  { %974 = vmatpush.bf16.msra.mxu0 %v1958_v31 }
 0x1d2   :  { %1041 = vmatpush.bf16.msra.mxu1 %v1904_v58  ;;  %1054 = vmatpush.bf16.msra.mxu2 %v1961_v32 }
 0x1d5   :  { %975 = vmatpush.bf16.msra.mxu0 %v1966_v38 }
 0x1d6   :  { %1042 = vmatpush.bf16.msra.mxu1 %v1907_v8  ;;  %1055 = vmatpush.bf16.msra.mxu2 %v1969_v39 }
 0x235   :  { %v765_v25 = vpop.f32.mrf.mxu0  ;;  %v778_v44 = vpop.f32.mrf.mxu1 }
 0x236   :  { %v795_v61 = vadd.f32 %v765_v25, %v2041_v53  ;;  %v815_v36 = vadd.f32 %v778_v44, %v335_v35 }
 0x238   :  { %v1543_v4 = vmul.f32 -1.442695, %v795_v61  ;;  %v1544_v6 = vmul.f32 -1.442695, %v815_v36 }
 0x23a   :  { %1639 = vpow2.f32 %v1543_v4  ;;  %v364_v4 = vadd.f32 %v2097_v9, %v2056_v47 }
 0x23b   :  { %1641 = vpow2.f32 %v1544_v6 }
 0x23c   :  { %v791_v20 = vpop.f32.mrf.mxu2 }
 0x23d   :  { %v767_v21 = vpop.f32.mrf.mxu0  ;;  %v780_v24 = vpop.f32.mrf.mxu1  ;;  %v835_v61 = vadd.f32 %v2061_v50, %v791_v20 }
 0x240   :  { %v1640_v27 = vpop.eup %1639 }
 0x241   :  { %v1642_v33 = vpop.eup %1641  ;;  %v799_v48 = vadd.f32 1.0, %v1640_v27 }
 0x242   :  { %v819_v41 = vadd.f32 1.0, %v1642_v33 }
 0x243   :  { %1643 = vrcp.f32 %v799_v48  ;;  %v811_v62 = vand.u32 2147483648, %v799_v48  ;;  %v809_v1 = vand.u32 2147483647, %v799_v48  ;;  %vm805_vm1 = vweird.f32 %v799_v48 }
 0x244   :  { %1645 = vrcp.f32 %v819_v41  ;;  %v793_v10 = vpop.f32.mrf.mxu2  ;;  %v831_v33 = vand.u32 2147483648, %v819_v41  ;;  %vm825_vm5 = vweird.f32 %v819_v41 }
 0x245   :  { %v812_v25 = vor.u32 1.1754944e-38, %v811_v62  ;;  %vm810_vm3 = vcmp.eq.f32.partialorder %v809_v1, 8.507059e+37 }
 0x249   :  { %v1644_v37 = vpop.eup %1643 }
 0x24a   :  { %v1646_v22 = vpop.eup %1645  ;;  %v801_v63 = vmul.f32 %v1644_v37, %v799_v48  ;;  %vm806_vm0 = vweird.f32 %v1644_v37  ;;  %v829_v48 = vand.u32 2147483647, %v819_v41 }
 0x24b   :  { %v821_v53 = vmul.f32 %v1646_v22, %v819_v41  ;;  %vm807_vm2 = vmor %vm805_vm1, %vm806_vm0  ;;  %vm826_vm4 = vweird.f32 %v1646_v22 }
 0x24c   :  { %v802_v5 = vsub.f32 1.0, %v801_v63  ;;  %vm827_vm6 = vmor %vm825_vm5, %vm826_vm4  ;;  %vm830_vm7 = vcmp.eq.f32.partialorder %v829_v48, 8.507059e+37 }
 0x24d   :  { %v822_v35 = vsub.f32 1.0, %v821_v53 }
 0x24e   :  { %v803_v13 = vmul.f32 %v1644_v37, %v802_v5 }
 0x24f   :  { %v823_v21 = vmul.f32 %v1646_v22, %v822_v35 }
 0x250   :  { %v804_v40 = vadd.f32 %v1644_v37, %v803_v13 }
 0x251   :  { %v824_v27 = vadd.f32 %v1646_v22, %v823_v21 }
 0x252   :  { %v808_v44 = vsel %vm807_vm2, %v1644_v37, %v804_v40  ;;  %v832_v37 = vor.u32 1.1754944e-38, %v831_v33 }
 0x253   :  { %v813_v36 = vsel %vm810_vm3, %v812_v25, %v808_v44  ;;  %v828_v10 = vsel %vm827_vm6, %v1646_v22, %v824_v27 }
 0x254   :  { %v836_v6 = vmul.f32 %v835_v61, %v813_v36  ;;  %v833_v5 = vsel %vm830_vm7, %v832_v37, %v828_v10 }
 0x256   :  { %v837_v24 = vadd.f32 %v836_v6, %v364_v4 }
 0x258   :  { %1647 = vtanh.f32 %v837_v24 }
 0x25e   :  { %v1648_v63 = vpop.eup %1647 }
 0x25f   :  { %v839_v20 = vsub.f32 %v2124_v14, %v1648_v63  ;;  %v337_v14 = vadd.f32 %v2099_v26, %v2045_v60 }
 0x261   :  { %v840_v53 = vmul.f32 %v839_v20, %v833_v5 }
 0x263   :  { %v2160_v62 = vadd.f32 %v1648_v63, %v840_v53 }
 0x265   :  { %843 = vst [vmem:[#allocation12 + $0x10] sm:$0xff] %v2160_v62  ;;  %v848_v9 = vpack.c.bf16 %v2160_v62, %v2160_v62 }
 0x267   :  { %857 = vmatmul.bf16.vlgmr.msrb.gmra.mxu3 %v848_v9  ;;  %870 = vmatmul.bf16.vlgmr.msrb.gmra.mxu0 %v848_v9 }
 0x268   :  { %883 = vmatmul.bf16.vlgmr.msrb.gmra.mxu1 %v848_v9  ;;  %1061 = vmatpush.bf16.msrb.mxu3 %v1913_v12 }
 0x269   :  { %1128 = vmatpush.bf16.msrb.mxu0 %v1886_v7  ;;  %1141 = vmatpush.bf16.msrb.mxu1 %v1915_v15 }
 0x26c   :  { %1062 = vmatpush.bf16.msrb.mxu3 %v1923_v28 }
 0x26d   :  { %1129 = vmatpush.bf16.msrb.mxu0 %v1889_v11  ;;  %1142 = vmatpush.bf16.msrb.mxu1 %v1926_v30 }
 0x270   :  { %1063 = vmatpush.bf16.msrb.mxu3 %v1931_v42 }
 0x271   :  { %1130 = vmatpush.bf16.msrb.mxu0 %v1892_v17  ;;  %1143 = vmatpush.bf16.msrb.mxu1 %v1934_v43 }
 0x274   :  { %1064 = vmatpush.bf16.msrb.mxu3 %v1937_v55 }
 0x275   :  { %1131 = vmatpush.bf16.msrb.mxu0 %v1895_v23  ;;  %1144 = vmatpush.bf16.msrb.mxu1 %v1940_v56 }
 0x278   :  { %1065 = vmatpush.bf16.msrb.mxu3 %v1943_v2 }
 0x279   :  { %1132 = vmatpush.bf16.msrb.mxu0 %v1898_v34  ;;  %1145 = vmatpush.bf16.msrb.mxu1 %v1946_v3 }
 0x27c   :  { %1066 = vmatpush.bf16.msrb.mxu3 %v1951_v18 }
 0x27d   :  { %1133 = vmatpush.bf16.msrb.mxu0 %v1901_v45  ;;  %1146 = vmatpush.bf16.msrb.mxu1 %v1954_v19 }
 0x280   :  { %1067 = vmatpush.bf16.msrb.mxu3 %v1958_v31 }
 0x281   :  { %1134 = vmatpush.bf16.msrb.mxu0 %v1904_v58  ;;  %1147 = vmatpush.bf16.msrb.mxu1 %v1961_v32 }
 0x284   :  { %1068 = vmatpush.bf16.msrb.mxu3 %v1966_v38 }
 0x285   :  { %1135 = vmatpush.bf16.msrb.mxu0 %v1907_v8  ;;  %1148 = vmatpush.bf16.msrb.mxu1 %v1969_v39 }
 0x2e4   :  { %v871_v41 = vpop.f32.mrf.mxu0 }
 0x2e5   :  { %v908_v22 = vadd.f32 %v871_v41, %v337_v14  ;;  %v884_v13 = vpop.f32.mrf.mxu1 }
 0x2e6   :  { %v928_v9 = vadd.f32 %v2061_v50, %v884_v13 }
 0x2e7   :  { %v1546_v1 = vmul.f32 -1.442695, %v908_v22  ;;  %v366_v22 = vadd.f32 %v2101_v46, %v2056_v47 }
 0x2e9   :  { %1649 = vpow2.f32 %v1546_v1 }
 0x2ea   :  { %v858_v40 = vpop.f32.mrf.mxu3 }
 0x2eb   :  { %v888_v35 = vadd.f32 %v858_v40, %v2043_v59 }
 0x2ec   :  { %v873_v25 = vpop.f32.mrf.mxu0 }
 0x2ed   :  { %v1545_v44 = vmul.f32 -1.442695, %v888_v35  ;;  %v886_v61 = vpop.f32.mrf.mxu1 }
 0x2ef   :  { %1651 = vpow2.f32 %v1545_v44  ;;  %v1650_v36 = vpop.eup %1649 }
 0x2f0   :  { %v912_v21 = vadd.f32 1.0, %v1650_v36 }
 0x2f2   :  { %v860_v4 = vpop.f32.mrf.mxu3  ;;  %v924_v44 = vand.u32 2147483648, %v912_v21  ;;  %vm918_vm13 = vweird.f32 %v912_v21  ;;  %v922_v61 = vand.u32 2147483647, %v912_v21 }
 0x2f4   :  { %vm923_vm15 = vcmp.eq.f32.partialorder %v922_v61, 8.507059e+37 }
 0x2f5   :  { %v1652_v6 = vpop.eup %1651 }
 0x2f6   :  { %v892_v24 = vadd.f32 1.0, %v1652_v6  ;;  %v925_v6 = vor.u32 1.1754944e-38, %v924_v44 }
 0x2f8   :  { %1653 = vrcp.f32 %v892_v24  ;;  %v904_v63 = vand.u32 2147483648, %v892_v24  ;;  %v902_v59 = vand.u32 2147483647, %v892_v24  ;;  %vm898_vm9 = vweird.f32 %v892_v24 }
 0x2f9   :  { %1655 = vrcp.f32 %v912_v21 }
 0x2fa   :  { %v905_v53 = vor.u32 1.1754944e-38, %v904_v63  ;;  %vm903_vm11 = vcmp.eq.f32.partialorder %v902_v59, 8.507059e+37 }
 0x2fe   :  { %v1654_v26 = vpop.eup %1653 }
 0x2ff   :  { %v1656_v27 = vpop.eup %1655  ;;  %v894_v33 = vmul.f32 %v1654_v26, %v892_v24  ;;  %vm899_vm8 = vweird.f32 %v1654_v26 }
 0x300   :  { %v914_v10 = vmul.f32 %v1656_v27, %v912_v21  ;;  %vm900_vm10 = vmor %vm898_vm9, %vm899_vm8  ;;  %vm919_vm12 = vweird.f32 %v1656_v27 }
 0x301   :  { %v895_v48 = vsub.f32 1.0, %v894_v33  ;;  %vm920_vm14 = vmor %vm918_vm13, %vm919_vm12 }
 0x302   :  { %v915_v5 = vsub.f32 1.0, %v914_v10 }
 0x303   :  { %v896_v37 = vmul.f32 %v1654_v26, %v895_v48 }
 0x304   :  { %v916_v40 = vmul.f32 %v1656_v27, %v915_v5 }
 0x305   :  { %v897_v20 = vadd.f32 %v1654_v26, %v896_v37 }
 0x306   :  { %v917_v25 = vadd.f32 %v1656_v27, %v916_v40 }
 0x307   :  { %v901_v14 = vsel %vm900_vm10, %v1654_v26, %v897_v20 }
 0x308   :  { %v906_v41 = vsel %vm903_vm11, %v905_v53, %v901_v14  ;;  %v921_v36 = vsel %vm920_vm14, %v1656_v27, %v917_v25 }
 0x309   :  { %v929_v1 = vmul.f32 %v928_v9, %v906_v41  ;;  %v926_v24 = vsel %vm923_vm15, %v925_v6, %v921_v36  ;;  %v369_v9 = vadd.f32 %v2105_v51, %v2056_v47 }
 0x30b   :  { %v930_v35 = vadd.f32 %v929_v1, %v366_v22 }
 0x30d   :  { %1657 = vtanh.f32 %v930_v35 }
 0x313   :  { %v1658_v4 = vpop.eup %1657 }
 0x314   :  { %v932_v13 = vsub.f32 %v2160_v62, %v1658_v4 }
 0x316   :  { %v933_v26 = vmul.f32 %v932_v13, %v926_v24 }
 0x318   :  { %v2196_v33 = vadd.f32 %v1658_v4, %v933_v26 }
 0x31a   :  { %936 = vst [vmem:[#allocation12 + $0x18] sm:$0xff] %v2196_v33  ;;  %v941_v46 = vpack.c.bf16 %v2196_v33, %v2196_v33 }
 0x31c   :  { %950 = vmatmul.bf16.vlgmr.msrb.gmra.mxu2 %v941_v46  ;;  %963 = vmatmul.bf16.vlgmr.msra.gmra.mxu3 %v941_v46 }
 0x31d   :  { %976 = vmatmul.bf16.vlgmr.msra.gmra.mxu0 %v941_v46  ;;  %1154 = vmatpush.bf16.msrb.mxu2 %v1913_v12 }
 0x31e   :  { %1221 = vmatpush.bf16.msra.mxu3 %v1886_v7  ;;  %1234 = vmatpush.bf16.msra.mxu0 %v1915_v15 }
 0x321   :  { %1155 = vmatpush.bf16.msrb.mxu2 %v1923_v28 }
 0x322   :  { %1222 = vmatpush.bf16.msra.mxu3 %v1889_v11  ;;  %1235 = vmatpush.bf16.msra.mxu0 %v1926_v30  ;;  %v340_v11 = vadd.f32 %v2103_v49, %v2045_v60 }
 0x325   :  { %1156 = vmatpush.bf16.msrb.mxu2 %v1931_v42 }
 0x326   :  { %1223 = vmatpush.bf16.msra.mxu3 %v1892_v17  ;;  %1236 = vmatpush.bf16.msra.mxu0 %v1934_v43 }
 0x329   :  { %1157 = vmatpush.bf16.msrb.mxu2 %v1937_v55 }
 0x32a   :  { %1224 = vmatpush.bf16.msra.mxu3 %v1895_v23  ;;  %1237 = vmatpush.bf16.msra.mxu0 %v1940_v56 }
 0x32d   :  { %1158 = vmatpush.bf16.msrb.mxu2 %v1943_v2 }
 0x32e   :  { %1225 = vmatpush.bf16.msra.mxu3 %v1898_v34  ;;  %1238 = vmatpush.bf16.msra.mxu0 %v1946_v3 }
 0x331   :  { %1159 = vmatpush.bf16.msrb.mxu2 %v1951_v18 }
 0x332   :  { %1226 = vmatpush.bf16.msra.mxu3 %v1901_v45  ;;  %1239 = vmatpush.bf16.msra.mxu0 %v1954_v19 }
 0x335   :  { %1160 = vmatpush.bf16.msrb.mxu2 %v1958_v31 }
 0x336   :  { %1227 = vmatpush.bf16.msra.mxu3 %v1904_v58  ;;  %1240 = vmatpush.bf16.msra.mxu0 %v1961_v32 }
 0x339   :  { %1161 = vmatpush.bf16.msrb.mxu2 %v1966_v38 }
 0x33a   :  { %1228 = vmatpush.bf16.msra.mxu3 %v1907_v8  ;;  %1241 = vmatpush.bf16.msra.mxu0 %v1969_v39 }
 0x39a   :  { %v977_v7 = vpop.f32.mrf.mxu0 }
 0x39b   :  { %v1021_v20 = vadd.f32 %v2061_v50, %v977_v7 }
 0x39f   :  { %v951_v17 = vpop.f32.mrf.mxu2  ;;  %v964_v23 = vpop.f32.mrf.mxu3 }
 0x3a0   :  { %v981_v34 = vadd.f32 %v951_v17, %v2047_v0  ;;  %v1001_v45 = vadd.f32 %v964_v23, %v340_v11 }
 0x3a2   :  { %v1547_v15 = vmul.f32 -1.442695, %v981_v34  ;;  %v1548_v30 = vmul.f32 -1.442695, %v1001_v45  ;;  %v979_v58 = vpop.f32.mrf.mxu0 }
 0x3a4   :  { %1659 = vpow2.f32 %v1547_v15 }
 0x3a5   :  { %1661 = vpow2.f32 %v1548_v30 }
 0x3a7   :  { %v953_v43 = vpop.f32.mrf.mxu2  ;;  %v966_v56 = vpop.f32.mrf.mxu3 }
 0x3aa   :  { %v1660_v3 = vpop.eup %1659 }
 0x3ab   :  { %v1662_v8 = vpop.eup %1661  ;;  %v985_v19 = vadd.f32 1.0, %v1660_v3 }
 0x3ac   :  { %v1005_v32 = vadd.f32 1.0, %v1662_v8 }
 0x3ad   :  { %1663 = vrcp.f32 %v985_v19  ;;  %v997_v27 = vand.u32 2147483648, %v985_v19  ;;  %v995_v10 = vand.u32 2147483647, %v985_v19  ;;  %vm991_vm1 = vweird.f32 %v985_v19 }
 0x3ae   :  { %1665 = vrcp.f32 %v1005_v32  ;;  %v1017_v40 = vand.u32 2147483648, %v1005_v32  ;;  %vm1011_vm5 = vweird.f32 %v1005_v32  ;;  %v1015_v35 = vand.u32 2147483647, %v1005_v32 }
 0x3af   :  { %v998_v37 = vor.u32 1.1754944e-38, %v997_v27  ;;  %vm996_vm3 = vcmp.eq.f32.partialorder %v995_v10, 8.507059e+37 }
 0x3b0   :  { %v1018_v61 = vor.u32 1.1754944e-38, %v1017_v40  ;;  %vm1016_vm7 = vcmp.eq.f32.partialorder %v1015_v35, 8.507059e+37 }
 0x3b3   :  { %v1664_v39 = vpop.eup %1663 }
 0x3b4   :  { %v1666_v49 = vpop.eup %1665  ;;  %v987_v62 = vmul.f32 %v1664_v39, %v985_v19  ;;  %vm992_vm0 = vweird.f32 %v1664_v39 }
 0x3b5   :  { %v1007_v0 = vmul.f32 %v1666_v49, %v1005_v32  ;;  %vm993_vm2 = vmor %vm991_vm1, %vm992_vm0  ;;  %vm1012_vm4 = vweird.f32 %v1666_v49 }
 0x3b6   :  { %v988_v21 = vsub.f32 1.0, %v987_v62  ;;  %vm1013_vm6 = vmor %vm1011_vm5, %vm1012_vm4 }
 0x3b7   :  { %v1008_v59 = vsub.f32 1.0, %v1007_v0 }
 0x3b8   :  { %v989_v48 = vmul.f32 %v1664_v39, %v988_v21 }
 0x3b9   :  { %v1009_v41 = vmul.f32 %v1666_v49, %v1008_v59 }
 0x3ba   :  { %v990_v63 = vadd.f32 %v1664_v39, %v989_v48 }
 0x3bb   :  { %v1010_v1 = vadd.f32 %v1666_v49, %v1009_v41 }
 0x3bc   :  { %v994_v5 = vsel %vm993_vm2, %v1664_v39, %v990_v63  ;;  %v371_v39 = vadd.f32 %v2109_v54, %v2056_v47 }
 0x3bd   :  { %v999_v53 = vsel %vm996_vm3, %v998_v37, %v994_v5  ;;  %v1014_v25 = vsel %vm1013_vm6, %v1666_v49, %v1010_v1 }
 0x3be   :  { %v1022_v14 = vmul.f32 %v1021_v20, %v999_v53  ;;  %v1019_v4 = vsel %vm1016_vm7, %v1018_v61, %v1014_v25 }
 0x3c0   :  { %v1023_v22 = vadd.f32 %v1022_v14, %v369_v9  ;;  %v345_v9 = vadd.f32 %v2111_v57, %v2045_v60 }
 0x3c2   :  { %1667 = vtanh.f32 %v1023_v22 }
 0x3c8   :  { %v1668_v44 = vpop.eup %1667 }
 0x3c9   :  { %v1025_v36 = vsub.f32 %v2196_v33, %v1668_v44 }
 0x3cb   :  { %v1026_v6 = vmul.f32 %v1025_v36, %v1019_v4 }
 0x3cd   :  { %v2232_v13 = vadd.f32 %v1668_v44, %v1026_v6 }
 0x3cf   :  { %1029 = vst [vmem:[#allocation12 + $0x20] sm:$0xff] %v2232_v13  ;;  %v1034_v51 = vpack.c.bf16 %v2232_v13, %v2232_v13 }
 0x3d1   :  { %1043 = vmatmul.bf16.vlgmr.msra.gmra.mxu1 %v1034_v51  ;;  %1056 = vmatmul.bf16.vlgmr.msra.gmra.mxu2 %v1034_v51 }
 0x3d2   :  { %1069 = vmatmul.bf16.vlgmr.msrb.gmra.mxu3 %v1034_v51  ;;  %1247 = vmatpush.bf16.msra.mxu1 %v1913_v12  ;;  %v342_v12 = vadd.f32 %v2107_v52, %v2045_v60 }
 0x3d6   :  { %1248 = vmatpush.bf16.msra.mxu1 %v1923_v28 }
 0x3da   :  { %1249 = vmatpush.bf16.msra.mxu1 %v1931_v42 }
 0x3de   :  { %1250 = vmatpush.bf16.msra.mxu1 %v1937_v55 }
 0x3e2   :  { %1251 = vmatpush.bf16.msra.mxu1 %v1943_v2 }
 0x3e6   :  { %1252 = vmatpush.bf16.msra.mxu1 %v1951_v18 }
 0x3ea   :  { %1253 = vmatpush.bf16.msra.mxu1 %v1958_v31 }
 0x3ee   :  { %1254 = vmatpush.bf16.msra.mxu1 %v1966_v38 }
 0x44e   :  { %v1044_v24 = vpop.f32.mrf.mxu1 }
 0x44f   :  { %v1074_v26 = vadd.f32 %v1044_v24, %v2050_v16 }
 0x451   :  { %v1549_v33 = vmul.f32 -1.442695, %v1074_v26 }
 0x453   :  { %1669 = vpow2.f32 %v1549_v33 }
 0x454   :  { %v1057_v28 = vpop.f32.mrf.mxu2 }
 0x455   :  { %v1094_v42 = vadd.f32 %v1057_v28, %v342_v12  ;;  %v1070_v46 = vpop.f32.mrf.mxu3 }
 0x456   :  { %v1046_v55 = vpop.f32.mrf.mxu1  ;;  %v1114_v19 = vadd.f32 %v2061_v50, %v1070_v46 }
 0x457   :  { %v1550_v7 = vmul.f32 -1.442695, %v1094_v42 }
 0x459   :  { %v1670_v2 = vpop.eup %1669  ;;  %1671 = vpow2.f32 %v1550_v7 }
 0x45a   :  { %v1078_v18 = vadd.f32 1.0, %v1670_v2 }
 0x45c   :  { %1673 = vrcp.f32 %v1078_v18  ;;  %v1059_v31 = vpop.f32.mrf.mxu2  ;;  %v1090_v45 = vand.u32 2147483648, %v1078_v18  ;;  %v1088_v15 = vand.u32 2147483647, %v1078_v18  ;;  %vm1084_vm9 = vweird.f32 %v1078_v18 }
 0x45d   :  { %v1072_v11 = vpop.f32.mrf.mxu3 }
 0x45e   :  { %v1091_v56 = vor.u32 1.1754944e-38, %v1090_v45  ;;  %vm1089_vm11 = vcmp.eq.f32.partialorder %v1088_v15, 8.507059e+37  ;;  %v2286_v11 = vld [vmem:[#allocation18_spill] sm:$0xff] }
 0x45f   :  { %v1672_v38 = vpop.eup %1671 }
 0x460   :  { %v1098_v17 = vadd.f32 1.0, %v1672_v38  ;;  %v374_v38 = vadd.f32 %v2286_v11, %v2056_v47 }
 0x462   :  { %v1674_v23 = vpop.eup %1673  ;;  %1675 = vrcp.f32 %v1098_v17  ;;  %v1110_v0 = vand.u32 2147483648, %v1098_v17  ;;  %vm1104_vm13 = vweird.f32 %v1098_v17  ;;  %v1108_v48 = vand.u32 2147483647, %v1098_v17 }
 0x463   :  { %v1080_v16 = vmul.f32 %v1674_v23, %v1078_v18  ;;  %vm1085_vm8 = vweird.f32 %v1674_v23 }
 0x464   :  { %vm1086_vm10 = vmor %vm1084_vm9, %vm1085_vm8  ;;  %v1111_v37 = vor.u32 1.1754944e-38, %v1110_v0  ;;  %vm1109_vm15 = vcmp.eq.f32.partialorder %v1108_v48, 8.507059e+37  ;;  %v2288_v0 = vld [vmem:[#allocation17_spill] sm:$0xff] }
 0x465   :  { %v1081_v34 = vsub.f32 1.0, %v1080_v16 }
 0x467   :  { %v1082_v52 = vmul.f32 %v1674_v23, %v1081_v34 }
 0x468   :  { %v1676_v30 = vpop.eup %1675 }
 0x469   :  { %v1100_v58 = vmul.f32 %v1676_v30, %v1098_v17  ;;  %v1083_v43 = vadd.f32 %v1674_v23, %v1082_v52  ;;  %vm1105_vm12 = vweird.f32 %v1676_v30 }
 0x46a   :  { %vm1106_vm14 = vmor %vm1104_vm13, %vm1105_vm12 }
 0x46b   :  { %v1101_v3 = vsub.f32 1.0, %v1100_v58  ;;  %v1087_v8 = vsel %vm1086_vm10, %v1674_v23, %v1083_v43 }
 0x46c   :  { %v1092_v32 = vsel %vm1089_vm11, %v1091_v56, %v1087_v8 }
 0x46d   :  { %v1115_v49 = vmul.f32 %v1114_v19, %v1092_v32  ;;  %v1102_v62 = vmul.f32 %v1676_v30, %v1101_v3  ;;  %v2287_v19 = vld [vmem:[#allocation19_spill] sm:$0xff] }
 0x46e   :  { %v347_v32 = vadd.f32 %v2287_v19, %v2045_v60 }
 0x46f   :  { %v1116_v21 = vadd.f32 %v1115_v49, %v371_v39  ;;  %v1103_v27 = vadd.f32 %v1676_v30, %v1102_v62 }
 0x471   :  { %1677 = vtanh.f32 %v1116_v21  ;;  %v1107_v10 = vsel %vm1106_vm14, %v1676_v30, %v1103_v27 }
 0x472   :  { %v1112_v20 = vsel %vm1109_vm15, %v1111_v37, %v1107_v10 }
 0x477   :  { %v1678_v63 = vpop.eup %1677 }
 0x478   :  { %v1118_v59 = vsub.f32 %v2232_v13, %v1678_v63 }
 0x47a   :  { %v1119_v5 = vmul.f32 %v1118_v59, %v1112_v20 }
 0x47c   :  { %v1120_v53 = vadd.f32 %v1678_v63, %v1119_v5 }
 0x47e   :  { %1122 = vst [vmem:[#allocation12 + $0x28] sm:$0xff] %v1120_v53  ;;  %v1127_v54 = vpack.c.bf16 %v1120_v53, %v1120_v53 }
 0x480   :  { %1136 = vmatmul.bf16.vlgmr.msrb.gmra.mxu0 %v1127_v54  ;;  %1149 = vmatmul.bf16.vlgmr.msrb.gmra.mxu1 %v1127_v54 }
 0x481   :  { %1162 = vmatmul.bf16.vlgmr.msrb.gmra.mxu2 %v1127_v54 }
 0x4fd   :  { %v1137_v14 = vpop.f32.mrf.mxu0  ;;  %v1150_v41 = vpop.f32.mrf.mxu1 }
 0x4fe   :  { %v1167_v22 = vadd.f32 %v1137_v14, %v2052_v29  ;;  %v1187_v1 = vadd.f32 %v1150_v41, %v345_v9 }
 0x500   :  { %v1551_v40 = vmul.f32 -1.442695, %v1167_v22  ;;  %v1552_v35 = vmul.f32 -1.442695, %v1187_v1 }
 0x502   :  { %1679 = vpow2.f32 %v1551_v40 }
 0x503   :  { %1681 = vpow2.f32 %v1552_v35 }
 0x504   :  { %v1163_v25 = vpop.f32.mrf.mxu2 }
 0x505   :  { %v1139_v44 = vpop.f32.mrf.mxu0  ;;  %v1152_v61 = vpop.f32.mrf.mxu1  ;;  %v1207_v18 = vadd.f32 %v2061_v50, %v1163_v25 }
 0x508   :  { %v1680_v36 = vpop.eup %1679 }
 0x509   :  { %v1682_v4 = vpop.eup %1681  ;;  %v1171_v6 = vadd.f32 1.0, %v1680_v36  ;;  %v1699_v36 = vld [vmem:[%s2280_s5] ss:$0 sm:$0xff]  ;;  %s1836_s5 = smov [#allocation12]  }
 0x50a   :  { %v1191_v13 = vadd.f32 1.0, %v1682_v4  ;;  %s1314_s22 = sshll.u32 %s1836_s5, 4  ;;  %s1315_s22 = int_to_ptr.vmem [resolvable:$true] %s1314_s22 }
 0x50b   :  { %1683 = vrcp.f32 %v1171_v6  ;;  %v1183_v12 = vand.u32 2147483648, %v1171_v6  ;;  %v1181_v42 = vand.u32 2147483647, %v1171_v6  ;;  %vm1177_vm1 = vweird.f32 %v1171_v6 }
 0x50c   :  { %1685 = vrcp.f32 %v1191_v13  ;;  %v1165_v51 = vpop.f32.mrf.mxu2  ;;  %v1203_v45 = vand.u32 2147483648, %v1191_v13  ;;  %vm1197_vm5 = vweird.f32 %v1191_v13  ;;  %v1201_v52 = vand.u32 2147483647, %v1191_v13 }
 0x50d   :  { %v1184_v7 = vor.u32 1.1754944e-38, %v1183_v12  ;;  %vm1182_vm3 = vcmp.eq.f32.partialorder %v1181_v42, 8.507059e+37  ;;  %v2289_v51 = vld [vmem:[#allocation20_spill] sm:$0xff] }
 0x50e   :  { %v1204_v58 = vor.u32 1.1754944e-38, %v1203_v45  ;;  %vm1202_vm7 = vcmp.eq.f32.partialorder %v1201_v52, 8.507059e+37 }
 0x511   :  { %v1684_v57 = vpop.eup %1683 }
 0x512   :  { %v1686_v24 = vpop.eup %1685  ;;  %v1173_v26 = vmul.f32 %v1684_v57, %v1171_v6  ;;  %vm1178_vm0 = vweird.f32 %v1684_v57 }
 0x513   :  { %v1193_v29 = vmul.f32 %v1686_v24, %v1191_v13  ;;  %vm1179_vm2 = vmor %vm1177_vm1, %vm1178_vm0  ;;  %vm1198_vm4 = vweird.f32 %v1686_v24 }
 0x514   :  { %v1174_v33 = vsub.f32 1.0, %v1173_v26  ;;  %vm1199_vm6 = vmor %vm1197_vm5, %vm1198_vm4 }
 0x515   :  { %v1194_v55 = vsub.f32 1.0, %v1193_v29 }
 0x516   :  { %v1175_v28 = vmul.f32 %v1684_v57, %v1174_v33 }
 0x517   :  { %v1195_v23 = vmul.f32 %v1686_v24, %v1194_v55 }
 0x518   :  { %v1176_v46 = vadd.f32 %v1684_v57, %v1175_v28 }
 0x519   :  { %v1196_v34 = vadd.f32 %v1686_v24, %v1195_v23 }
 0x51a   :  { %v1180_v2 = vsel %vm1179_vm2, %v1684_v57, %v1176_v46  ;;  %v376_v57 = vadd.f32 %v2289_v51, %v2056_v47 }
 0x51b   :  { %v1185_v31 = vsel %vm1182_vm3, %v1184_v7, %v1180_v2  ;;  %v1200_v15 = vsel %vm1199_vm6, %v1686_v24, %v1196_v34 }
 0x51c   :  { %v1208_v17 = vmul.f32 %v1207_v18, %v1185_v31  ;;  %v1205_v50 = vsel %vm1202_vm7, %v1204_v58, %v1200_v15 }
 0x51e   :  { %v1209_v16 = vadd.f32 %v1208_v17, %v374_v38 }
 0x520   :  { %1687 = vtanh.f32 %v1209_v16 }
 0x526   :  { %v1688_v30 = vpop.eup %1687 }
 0x527   :  { %v1211_v43 = vsub.f32 %v1120_v53, %v1688_v30 }
 0x529   :  { %v1212_v56 = vmul.f32 %v1211_v43, %v1205_v50 }
 0x52b   :  { %v2258_v3 = vadd.f32 %v1688_v30, %v1212_v56 }
 0x52d   :  { %1215 = vst [vmem:[#allocation12 + $0x30] sm:$0xff] %v2258_v3  ;;  %v1220_v8 = vpack.c.bf16 %v2258_v3, %v2258_v3 }
 0x52f   :  { %1229 = vmatmul.bf16.vlgmr.msra.gmra.mxu3 %v1220_v8  ;;  %1242 = vmatmul.bf16.vlgmr.msra.gmra.mxu0 %v1220_v8 }
 0x530   :  { %1255 = vmatmul.bf16.vlgmr.msra.gmra.mxu1 %v1220_v8 }
 0x5ac   :  { %v1243_v39 = vpop.f32.mrf.mxu0 }
 0x5ad   :  { %v1280_v49 = vadd.f32 %v1243_v39, %v347_v32  ;;  %v1256_v62 = vpop.f32.mrf.mxu1 }
 0x5ae   :  { %v1300_v4 = vadd.f32 %v1699_v36, %v1256_v62 }
 0x5af   :  { %v1554_v21 = vmul.f32 -1.442695, %v1280_v49 }
 0x5b1   :  { %1689 = vpow2.f32 %v1554_v21 }
 0x5b2   :  { %v1230_v27 = vpop.f32.mrf.mxu3 }
 0x5b3   :  { %v1260_v48 = vadd.f32 %v1230_v27, %v2288_v0 }
 0x5b4   :  { %v1245_v10 = vpop.f32.mrf.mxu0 }
 0x5b5   :  { %v1553_v63 = vmul.f32 -1.442695, %v1260_v48  ;;  %v1258_v37 = vpop.f32.mrf.mxu1 }
 0x5b7   :  { %1691 = vpow2.f32 %v1553_v63  ;;  %v1690_v59 = vpop.eup %1689 }
 0x5b8   :  { %v1284_v53 = vadd.f32 1.0, %v1690_v59 }
 0x5ba   :  { %v1232_v20 = vpop.f32.mrf.mxu3  ;;  %v1296_v12 = vand.u32 2147483648, %v1284_v53  ;;  %vm1290_vm13 = vweird.f32 %v1284_v53  ;;  %v1294_v28 = vand.u32 2147483647, %v1284_v53 }
 0x5bc   :  { %v1297_v55 = vor.u32 1.1754944e-38, %v1296_v12  ;;  %vm1295_vm15 = vcmp.eq.f32.partialorder %v1294_v28, 8.507059e+37 }
 0x5bd   :  { %v1692_v5 = vpop.eup %1691 }
 0x5be   :  { %v1264_v54 = vadd.f32 1.0, %v1692_v5 }
 0x5c0   :  { %1693 = vrcp.f32 %v1264_v54  ;;  %v1276_v1 = vand.u32 2147483648, %v1264_v54  ;;  %v1274_v35 = vand.u32 2147483647, %v1264_v54  ;;  %vm1270_vm9 = vweird.f32 %v1264_v54 }
 0x5c1   :  { %1695 = vrcp.f32 %v1284_v53 }
 0x5c2   :  { %v1277_v61 = vor.u32 1.1754944e-38, %v1276_v1  ;;  %vm1275_vm11 = vcmp.eq.f32.partialorder %v1274_v35, 8.507059e+37 }
 0x5c6   :  { %v1694_v60 = vpop.eup %1693 }
 0x5c7   :  { %v1696_v9 = vpop.eup %1695  ;;  %v1266_v14 = vmul.f32 %v1694_v60, %v1264_v54  ;;  %vm1271_vm8 = vweird.f32 %v1694_v60 }
 0x5c8   :  { %v1286_v22 = vmul.f32 %v1696_v9, %v1284_v53  ;;  %vm1272_vm10 = vmor %vm1270_vm9, %vm1271_vm8  ;;  %vm1291_vm12 = vweird.f32 %v1696_v9 }
 0x5c9   :  { %v1267_v41 = vsub.f32 1.0, %v1266_v14  ;;  %vm1292_vm14 = vmor %vm1290_vm13, %vm1291_vm12 }
 0x5ca   :  { %v1287_v44 = vsub.f32 1.0, %v1286_v22 }
 0x5cb   :  { %v1268_v40 = vmul.f32 %v1694_v60, %v1267_v41 }
 0x5cc   :  { %v1288_v26 = vmul.f32 %v1696_v9, %v1287_v44 }
 0x5cd   :  { %v1269_v25 = vadd.f32 %v1694_v60, %v1268_v40 }
 0x5ce   :  { %v1289_v29 = vadd.f32 %v1696_v9, %v1288_v26 }
 0x5cf   :  { %v1273_v6 = vsel %vm1272_vm10, %v1694_v60, %v1269_v25 }
 0x5d0   :  { %v1278_v13 = vsel %vm1275_vm11, %v1277_v61, %v1273_v6  ;;  %v1293_v42 = vsel %vm1292_vm14, %v1696_v9, %v1289_v29 }
 0x5d1   :  { %v1301_v24 = vmul.f32 %v1300_v4, %v1278_v13  ;;  %v1298_v47 = vsel %vm1295_vm15, %v1297_v55, %v1293_v42 }
 0x5d3   :  { %v1302_v33 = vadd.f32 %v1301_v24, %v376_v57 }
 0x5d5   :  { %1697 = vtanh.f32 %v1302_v33 }
 0x5db   :  { %v1698_v46 = vpop.eup %1697 }
 0x5dc   :  { %v1304_v7 = vsub.f32 %v2258_v3, %v1698_v46 }
 0x5de   :  { %v1305_v2 = vmul.f32 %v1304_v7, %v1298_v47 }
 0x5e0   :  { %v1306_v18 = vadd.f32 %v1698_v46, %v1305_v2 }
 0x5e2   :  { %1308 = vst [vmem:[#allocation12 + $0x38] sm:$0xff] %v1306_v18 }
 0x5e3   :  { %1322 = dma.vmem_to_hbm [thread:$0]  %s1315_s22, 1024, %s1317_s25, [#allocation6], %s1837_s26, %s1837_s26, %s1838_s27  }
 0x5e4   :  { %1826 = dma.done.wait [#allocation6], 1024  }
 0x5e5   :  { %1827 = vsyncadd [#allocation6], 4294966272 }
 0x5e6   :  { %1327 = vsyncpa [#allocation5], 1 }
 0x5e7   :  { %1328 = vsyncpa [#allocation8], 1 }
 0x5e8   :  { %1329 = vsyncpa [#allocation11], 1 }
 0x5e9   :  { %1330 = vsyncpa [#allocation6], 1 }

</bundles_post_ra>
